<compile_context>
chip_gen: v7x
topology: tpu7x:2x2x1
jax: 0.10.0
libtpu: 0.0.40
codegen_flags: <defaults>
</compile_context>

<pallas_src>
import math

import jax
import jax.numpy as jnp
from jax import lax
from jax.experimental import pallas as pl
from jax.experimental.pallas import tpu as pltpu


# --------------------------------------------------------------------------
# Single fused kernel: LSTM stack -> ReLU -> Linear, all resident in VMEM.
# --------------------------------------------------------------------------
def make_fused_lstm_kernel(layer_num, T, Bp, H):
    def kernel(*refs):
        x_ref = refs[0]                                   # (T*Bp, D_in)
        layer_refs = refs[1:1 + 3 * layer_num]            # per layer: wih_t, whh_t, bias
        fcw_ref = refs[1 + 3 * layer_num]                 # (H, O)
        fcb_ref = refs[2 + 3 * layer_num]                 # (1, O)
        out_ref = refs[3 + 3 * layer_num]                 # (T*Bp, O)
        act_a, act_b, gbuf = refs[4 + 3 * layer_num:]     # VMEM scratch slabs

        slabs = (act_a, act_b)                            # ping-pong layer activations

        for l in range(layer_num):
            wih_t = layer_refs[3 * l][...]                # (D_l, 4H)
            whh_t = layer_refs[3 * l + 1][...]            # (H, 4H)
            bias = layer_refs[3 * l + 2][...]             # (1, 4H)

            src_ref = x_ref if l == 0 else slabs[(l - 1) % 2]
            dst_ref = slabs[l % 2]

            # Hoisted input projection: one batched MXU matmul per layer, staged in a
            # VMEM slab so the time loop only does small per-step loads (bounded vregs).
            gbuf[...] = (
                jnp.dot(src_ref[...], wih_t, preferred_element_type=jnp.float32) + bias
            )

            h = jnp.zeros((Bp, H), jnp.float32)
            c = jnp.zeros((Bp, H), jnp.float32)
            for t in range(T):                            # static unroll (T is small/static)
                gates = gbuf[t * Bp:(t + 1) * Bp, :]      # sublane-aligned (Bp, 4H) slice
                if t > 0:                                 # h == 0 at t == 0 -> skip matmul
                    gates = gates + jnp.dot(
                        h, whh_t, preferred_element_type=jnp.float32)
                # Full-vreg transcendentals: 1 sigmoid + 1 tanh over (Bp, 4H), then slice.
                sg = jax.nn.sigmoid(gates)
                tg = jnp.tanh(gates)
                i_g = sg[:, 0 * H:1 * H]
                f_g = sg[:, 1 * H:2 * H]
                o_g = sg[:, 3 * H:4 * H]
                g_g = tg[:, 2 * H:3 * H]
                c = f_g * c + i_g * g_g
                h = o_g * jnp.tanh(c)
                dst_ref[t * Bp:(t + 1) * Bp, :] = h       # bounded live range per step

        # Fused epilogue: ReLU + Linear; single store of the final result.
        final_ref = slabs[(layer_num - 1) % 2]
        act = jnp.maximum(final_ref[...], 0.0)
        out_ref[...] = (
            jnp.dot(act, fcw_ref[...], preferred_element_type=jnp.float32)
            + fcb_ref[...]
        )

    return kernel


# --------------------------------------------------------------------------
# Wrapper: weight/layout prep (transpose, bias folding, batch padding) + call.
# --------------------------------------------------------------------------
def lstm_igt_forward(x, lstm_params, fc_w, fc_b):
    """x: (T, B, in_dim); lstm_params: list of (w_ih, w_hh, b_ih, b_hh) in PyTorch
    layouts; fc_w: (out, H); fc_b: (out,). Returns (T, B, out)."""
    T, B, _ = x.shape
    H = lstm_params[0][1].shape[1]                        # w_hh: (4H, H)
    O = fc_w.shape[0]
    L = len(lstm_params)
    Bp = max(8, ((B + 7) // 8) * 8)                       # pad batch to fp32 sublane height

    x2d = jnp.pad(x, ((0, 0), (0, Bp - B), (0, 0))).reshape(T * Bp, -1)

    args = [x2d]
    for (w_ih, w_hh, b_ih, b_hh) in lstm_params:
        args.append(jnp.transpose(w_ih))                  # (D_l, 4H)
        args.append(jnp.transpose(w_hh))                  # (H, 4H)
        args.append((b_ih + b_hh).reshape(1, 4 * H))      # folded bias, (1, 4H)
    args.append(jnp.transpose(fc_w))                      # (H, O)
    args.append(fc_b.reshape(1, O))                       # (1, O)

    out2d = pl.pallas_call(
        make_fused_lstm_kernel(L, T, Bp, H),
        out_shape=jax.ShapeDtypeStruct((T * Bp, O), jnp.float32),
        in_specs=[pl.BlockSpec(memory_space=pltpu.MemorySpace.VMEM) for _ in args],
        out_specs=pl.BlockSpec(memory_space=pltpu.MemorySpace.VMEM),
        scratch_shapes=[
            pltpu.VMEM((T * Bp, H), jnp.float32),         # layer activations (slab A)
            pltpu.VMEM((T * Bp, H), jnp.float32),         # layer activations (slab B)
            pltpu.VMEM((T * Bp, 4 * H), jnp.float32),     # hoisted gate projection
        ],
        compiler_params=pltpu.CompilerParams(vmem_limit_bytes=32 * 1024 * 1024),
    )(*args)

    return out2d.reshape(T, Bp, O)[:, :B, :]


# --------------------------------------------------------------------------
# Pure-JAX reference (high-precision matmuls) for correctness checking.
# --------------------------------------------------------------------------
def reference_forward(x, lstm_params, fc_w, fc_b):
    hp = lax.Precision.HIGHEST
    h_seq = x
    for (w_ih, w_hh, b_ih, b_hh) in lstm_params:
        T, B, _ = h_seq.shape
        H = w_hh.shape[1]

        def step(carry, x_t, w_ih=w_ih, w_hh=w_hh, b_ih=b_ih, b_hh=b_hh, H=H):
            h, c = carry
            gates = (jnp.dot(x_t, w_ih.T, precision=hp)
                     + jnp.dot(h, w_hh.T, precision=hp) + b_ih + b_hh)
            i = jax.nn.sigmoid(gates[:, 0 * H:1 * H])
            f = jax.nn.sigmoid(gates[:, 1 * H:2 * H])
            g = jnp.tanh(gates[:, 2 * H:3 * H])
            o = jax.nn.sigmoid(gates[:, 3 * H:4 * H])
            c_new = f * c + i * g
            h_new = o * jnp.tanh(c_new)
            return (h_new, c_new), h_new

        init = (jnp.zeros((B, H), jnp.float32), jnp.zeros((B, H), jnp.float32))
        _, h_seq = jax.lax.scan(step, init, h_seq)
    out = jnp.maximum(h_seq, 0.0)
    return jnp.dot(out, fc_w.T, precision=hp) + fc_b


if __name__ == "__main__":
    # Small shapes consistent with the module: seq=8, batch=4, in=16, hidden=32, out=8, 2 layers
    in_dim, hidden_dim, out_dim, layer_num = 16, 32, 8, 2
    T, B = 8, 4
    scale = math.sqrt(1.0 / hidden_dim)   # weightInit from the module

    key = jax.random.PRNGKey(0)
    keys = jax.random.split(key, 2 + 4 * layer_num + 2)
    x = jax.random.normal(keys[0], (T, B, in_dim), dtype=jnp.float32)

    lstm_params = []
    ki = 1
    for layer in range(layer_num):
        d_in = in_dim if layer == 0 else hidden_dim
        w_ih = jax.random.uniform(keys[ki], (4 * hidden_dim, d_in),
                                  minval=-scale, maxval=scale, dtype=jnp.float32)
        w_hh = jax.random.uniform(keys[ki + 1], (4 * hidden_dim, hidden_dim),
                                  minval=-scale, maxval=scale, dtype=jnp.float32)
        b_ih = jax.random.uniform(keys[ki + 2], (4 * hidden_dim,),
                                  minval=-scale, maxval=scale, dtype=jnp.float32)
        b_hh = jax.random.uniform(keys[ki + 3], (4 * hidden_dim,),
                                  minval=-scale, maxval=scale, dtype=jnp.float32)
        lstm_params.append((w_ih, w_hh, b_ih, b_hh))
        ki += 4

    fc_w = jax.random.uniform(keys[ki], (out_dim, hidden_dim),
                              minval=-scale, maxval=scale, dtype=jnp.float32)
    fc_b = jax.random.uniform(keys[ki + 1], (out_dim,),
                              minval=-scale, maxval=scale, dtype=jnp.float32)

    y = lstm_igt_forward(x, lstm_params, fc_w, fc_b)
    y = jax.block_until_ready(y)

    y_ref = reference_forward(x, lstm_params, fc_w, fc_b)
    assert y.shape == (T, B, out_dim)
    assert jnp.allclose(y, y_ref, atol=1e-3, rtol=1e-3)

    print("KERNEL_OK")
</pallas_src>

<mosaic_0001>
module attributes {stable_mosaic.version = 11 : i64} {
  func.func @kernel(%arg0: memref<64x16xf32, #tpu.memory_space<vmem>>, %arg1: memref<16x128xf32, #tpu.memory_space<vmem>>, %arg2: memref<32x128xf32, #tpu.memory_space<vmem>>, %arg3: memref<1x128xf32, #tpu.memory_space<vmem>>, %arg4: memref<32x128xf32, #tpu.memory_space<vmem>>, %arg5: memref<32x128xf32, #tpu.memory_space<vmem>>, %arg6: memref<1x128xf32, #tpu.memory_space<vmem>>, %arg7: memref<32x8xf32, #tpu.memory_space<vmem>>, %arg8: memref<1x8xf32, #tpu.memory_space<vmem>>, %arg9: memref<64x8xf32, #tpu.memory_space<vmem>>, %arg10: memref<64x32xf32, #tpu.memory_space<vmem>>, %arg11: memref<64x32xf32, #tpu.memory_space<vmem>>, %arg12: memref<64x128xf32, #tpu.memory_space<vmem>>) attributes {dimension_semantics = [], scalar_prefetch = 0 : i64, scratch_operands = 3 : i64, tpu.core_type = #tpu.core_type<tc>} {
    %c0 = arith.constant 0 : index
    %c0_0 = arith.constant 0 : index
    %0 = vector.load %arg1[%c0, %c0_0] : memref<16x128xf32, #tpu.memory_space<vmem>>, vector<16x128xf32>
    %c0_1 = arith.constant 0 : index
    %c0_2 = arith.constant 0 : index
    %1 = vector.load %arg2[%c0_1, %c0_2] : memref<32x128xf32, #tpu.memory_space<vmem>>, vector<32x128xf32>
    %c0_3 = arith.constant 0 : index
    %c0_4 = arith.constant 0 : index
    %2 = vector.load %arg3[%c0_3, %c0_4] : memref<1x128xf32, #tpu.memory_space<vmem>>, vector<1x128xf32>
    %c0_5 = arith.constant 0 : index
    %c0_6 = arith.constant 0 : index
    %3 = vector.load %arg0[%c0_5, %c0_6] : memref<64x16xf32, #tpu.memory_space<vmem>>, vector<64x16xf32>
    %cst = arith.constant dense<0.000000e+00> : vector<64x128xf32>
    %4 = tpu.matmul %3, %0, %cst {dimension_numbers = #tpu.dot_dimension_numbers<[1], [0], [0], [1], [0, 0, 1, 1], [], []>} : vector<64x16xf32>, vector<16x128xf32>, vector<64x128xf32> -> vector<64x128xf32>
    %5 = vector.broadcast %2 : vector<1x128xf32> to vector<64x128xf32>
    %6 = arith.addf %4, %5 : vector<64x128xf32>
    %c0_7 = arith.constant 0 : index
    %c0_8 = arith.constant 0 : index
    %7 = vector.load %arg12[%c0_7, %c0_8] : memref<64x128xf32, #tpu.memory_space<vmem>>, vector<64x128xf32>
    tpu.vector_store %arg12[%c0_7, %c0_8], %6 {strides = array<i32>} : memref<64x128xf32, #tpu.memory_space<vmem>>, vector<64x128xf32>,
    %cst_9 = arith.constant 0.000000e+00 : f32
    %8 = vector.broadcast %cst_9 : f32 to vector<8x32xf32>
    %c0_10 = arith.constant 0 : index
    %c0_11 = arith.constant 0 : index
    %9 = vector.load %arg12[%c0_10, %c0_11] : memref<64x128xf32, #tpu.memory_space<vmem>>, vector<8x128xf32>
    %10 = arith.negf %9 : vector<8x128xf32>
    %11 = math.exp %10 : vector<8x128xf32>
    %cst_12 = arith.constant 1.000000e+00 : f32
    %12 = vector.broadcast %cst_12 : f32 to vector<8x128xf32>
    %13 = arith.addf %12, %11 : vector<8x128xf32>
    %14 = arith.divf %12, %13 : vector<8x128xf32>
    %15 = math.tanh %9 : vector<8x128xf32>
    %16 = vector.extract_strided_slice %14 {offsets = [0, 0], sizes = [8, 32], strides = [1, 1]} : vector<8x128xf32> to vector<8x32xf32>
    %17 = vector.extract_strided_slice %14 {offsets = [0, 32], sizes = [8, 32], strides = [1, 1]} : vector<8x128xf32> to vector<8x32xf32>
    %18 = vector.extract_strided_slice %14 {offsets = [0, 96], sizes = [8, 32], strides = [1, 1]} : vector<8x128xf32> to vector<8x32xf32>
    %19 = vector.extract_strided_slice %15 {offsets = [0, 64], sizes = [8, 32], strides = [1, 1]} : vector<8x128xf32> to vector<8x32xf32>
    %20 = arith.mulf %17, %8 : vector<8x32xf32>
    %21 = arith.mulf %16, %19 : vector<8x32xf32>
    %22 = arith.addf %20, %21 : vector<8x32xf32>
    %23 = math.tanh %22 : vector<8x32xf32>
    %24 = arith.mulf %18, %23 : vector<8x32xf32>
    %c0_13 = arith.constant 0 : index
    %c0_14 = arith.constant 0 : index
    %25 = vector.load %arg10[%c0_13, %c0_14] : memref<64x32xf32, #tpu.memory_space<vmem>>, vector<8x32xf32>
    tpu.vector_store %arg10[%c0_13, %c0_14], %24 {strides = array<i32>} : memref<64x32xf32, #tpu.memory_space<vmem>>, vector<8x32xf32>,
    %c8 = arith.constant 8 : index
    %c0_15 = arith.constant 0 : index
    %26 = vector.load %arg12[%c8, %c0_15] : memref<64x128xf32, #tpu.memory_space<vmem>>, vector<8x128xf32>
    %cst_16 = arith.constant dense<0.000000e+00> : vector<8x128xf32>
    %27 = tpu.matmul %24, %1, %cst_16 {dimension_numbers = #tpu.dot_dimension_numbers<[1], [0], [0], [1], [0, 0, 1, 1], [], []>} : vector<8x32xf32>, vector<32x128xf32>, vector<8x128xf32> -> vector<8x128xf32>
    %28 = arith.addf %26, %27 : vector<8x128xf32>
    %29 = arith.negf %28 : vector<8x128xf32>
    %30 = math.exp %29 : vector<8x128xf32>
    %cst_17 = arith.constant 1.000000e+00 : f32
    %31 = vector.broadcast %cst_17 : f32 to vector<8x128xf32>
    %32 = arith.addf %31, %30 : vector<8x128xf32>
    %33 = arith.divf %31, %32 : vector<8x128xf32>
    %34 = math.tanh %28 : vector<8x128xf32>
    %35 = vector.extract_strided_slice %33 {offsets = [0, 0], sizes = [8, 32], strides = [1, 1]} : vector<8x128xf32> to vector<8x32xf32>
    %36 = vector.extract_strided_slice %33 {offsets = [0, 32], sizes = [8, 32], strides = [1, 1]} : vector<8x128xf32> to vector<8x32xf32>
    %37 = vector.extract_strided_slice %33 {offsets = [0, 96], sizes = [8, 32], strides = [1, 1]} : vector<8x128xf32> to vector<8x32xf32>
    %38 = vector.extract_strided_slice %34 {offsets = [0, 64], sizes = [8, 32], strides = [1, 1]} : vector<8x128xf32> to vector<8x32xf32>
    %39 = arith.mulf %36, %22 : vector<8x32xf32>
    %40 = arith.mulf %35, %38 : vector<8x32xf32>
    %41 = arith.addf %39, %40 : vector<8x32xf32>
    %42 = math.tanh %41 : vector<8x32xf32>
    %43 = arith.mulf %37, %42 : vector<8x32xf32>
    %c8_18 = arith.constant 8 : index
    %c0_19 = arith.constant 0 : index
    %44 = vector.load %arg10[%c8_18, %c0_19] : memref<64x32xf32, #tpu.memory_space<vmem>>, vector<8x32xf32>
    tpu.vector_store %arg10[%c8_18, %c0_19], %43 {strides = array<i32>} : memref<64x32xf32, #tpu.memory_space<vmem>>, vector<8x32xf32>,
    %c16 = arith.constant 16 : index
    %c0_20 = arith.constant 0 : index
    %45 = vector.load %arg12[%c16, %c0_20] : memref<64x128xf32, #tpu.memory_space<vmem>>, vector<8x128xf32>
    %cst_21 = arith.constant dense<0.000000e+00> : vector<8x128xf32>
    %46 = tpu.matmul %43, %1, %cst_21 {dimension_numbers = #tpu.dot_dimension_numbers<[1], [0], [0], [1], [0, 0, 1, 1], [], []>} : vector<8x32xf32>, vector<32x128xf32>, vector<8x128xf32> -> vector<8x128xf32>
    %47 = arith.addf %45, %46 : vector<8x128xf32>
    %48 = arith.negf %47 : vector<8x128xf32>
    %49 = math.exp %48 : vector<8x128xf32>
    %cst_22 = arith.constant 1.000000e+00 : f32
    %50 = vector.broadcast %cst_22 : f32 to vector<8x128xf32>
    %51 = arith.addf %50, %49 : vector<8x128xf32>
    %52 = arith.divf %50, %51 : vector<8x128xf32>
    %53 = math.tanh %47 : vector<8x128xf32>
    %54 = vector.extract_strided_slice %52 {offsets = [0, 0], sizes = [8, 32], strides = [1, 1]} : vector<8x128xf32> to vector<8x32xf32>
    %55 = vector.extract_strided_slice %52 {offsets = [0, 32], sizes = [8, 32], strides = [1, 1]} : vector<8x128xf32> to vector<8x32xf32>
    %56 = vector.extract_strided_slice %52 {offsets = [0, 96], sizes = [8, 32], strides = [1, 1]} : vector<8x128xf32> to vector<8x32xf32>
    %57 = vector.extract_strided_slice %53 {offsets = [0, 64], sizes = [8, 32], strides = [1, 1]} : vector<8x128xf32> to vector<8x32xf32>
    %58 = arith.mulf %55, %41 : vector<8x32xf32>
    %59 = arith.mulf %54, %57 : vector<8x32xf32>
    %60 = arith.addf %58, %59 : vector<8x32xf32>
    %61 = math.tanh %60 : vector<8x32xf32>
    %62 = arith.mulf %56, %61 : vector<8x32xf32>
    %c16_23 = arith.constant 16 : index
    %c0_24 = arith.constant 0 : index
    %63 = vector.load %arg10[%c16_23, %c0_24] : memref<64x32xf32, #tpu.memory_space<vmem>>, vector<8x32xf32>
    tpu.vector_store %arg10[%c16_23, %c0_24], %62 {strides = array<i32>} : memref<64x32xf32, #tpu.memory_space<vmem>>, vector<8x32xf32>,
    %c24 = arith.constant 24 : index
    %c0_25 = arith.constant 0 : index
    %64 = vector.load %arg12[%c24, %c0_25] : memref<64x128xf32, #tpu.memory_space<vmem>>, vector<8x128xf32>
    %cst_26 = arith.constant dense<0.000000e+00> : vector<8x128xf32>
    %65 = tpu.matmul %62, %1, %cst_26 {dimension_numbers = #tpu.dot_dimension_numbers<[1], [0], [0], [1], [0, 0, 1, 1], [], []>} : vector<8x32xf32>, vector<32x128xf32>, vector<8x128xf32> -> vector<8x128xf32>
    %66 = arith.addf %64, %65 : vector<8x128xf32>
    %67 = arith.negf %66 : vector<8x128xf32>
    %68 = math.exp %67 : vector<8x128xf32>
    %cst_27 = arith.constant 1.000000e+00 : f32
    %69 = vector.broadcast %cst_27 : f32 to vector<8x128xf32>
    %70 = arith.addf %69, %68 : vector<8x128xf32>
    %71 = arith.divf %69, %70 : vector<8x128xf32>
    %72 = math.tanh %66 : vector<8x128xf32>
    %73 = vector.extract_strided_slice %71 {offsets = [0, 0], sizes = [8, 32], strides = [1, 1]} : vector<8x128xf32> to vector<8x32xf32>
    %74 = vector.extract_strided_slice %71 {offsets = [0, 32], sizes = [8, 32], strides = [1, 1]} : vector<8x128xf32> to vector<8x32xf32>
    %75 = vector.extract_strided_slice %71 {offsets = [0, 96], sizes = [8, 32], strides = [1, 1]} : vector<8x128xf32> to vector<8x32xf32>
    %76 = vector.extract_strided_slice %72 {offsets = [0, 64], sizes = [8, 32], strides = [1, 1]} : vector<8x128xf32> to vector<8x32xf32>
    %77 = arith.mulf %74, %60 : vector<8x32xf32>
    %78 = arith.mulf %73, %76 : vector<8x32xf32>
    %79 = arith.addf %77, %78 : vector<8x32xf32>
    %80 = math.tanh %79 : vector<8x32xf32>
    %81 = arith.mulf %75, %80 : vector<8x32xf32>
    %c24_28 = arith.constant 24 : index
    %c0_29 = arith.constant 0 : index
    %82 = vector.load %arg10[%c24_28, %c0_29] : memref<64x32xf32, #tpu.memory_space<vmem>>, vector<8x32xf32>
    tpu.vector_store %arg10[%c24_28, %c0_29], %81 {strides = array<i32>} : memref<64x32xf32, #tpu.memory_space<vmem>>, vector<8x32xf32>,
    %c32 = arith.constant 32 : index
    %c0_30 = arith.constant 0 : index
    %83 = vector.load %arg12[%c32, %c0_30] : memref<64x128xf32, #tpu.memory_space<vmem>>, vector<8x128xf32>
    %cst_31 = arith.constant dense<0.000000e+00> : vector<8x128xf32>
    %84 = tpu.matmul %81, %1, %cst_31 {dimension_numbers = #tpu.dot_dimension_numbers<[1], [0], [0], [1], [0, 0, 1, 1], [], []>} : vector<8x32xf32>, vector<32x128xf32>, vector<8x128xf32> -> vector<8x128xf32>
    %85 = arith.addf %83, %84 : vector<8x128xf32>
    %86 = arith.negf %85 : vector<8x128xf32>
    %87 = math.exp %86 : vector<8x128xf32>
    %cst_32 = arith.constant 1.000000e+00 : f32
    %88 = vector.broadcast %cst_32 : f32 to vector<8x128xf32>
    %89 = arith.addf %88, %87 : vector<8x128xf32>
    %90 = arith.divf %88, %89 : vector<8x128xf32>
    %91 = math.tanh %85 : vector<8x128xf32>
    %92 = vector.extract_strided_slice %90 {offsets = [0, 0], sizes = [8, 32], strides = [1, 1]} : vector<8x128xf32> to vector<8x32xf32>
    %93 = vector.extract_strided_slice %90 {offsets = [0, 32], sizes = [8, 32], strides = [1, 1]} : vector<8x128xf32> to vector<8x32xf32>
    %94 = vector.extract_strided_slice %90 {offsets = [0, 96], sizes = [8, 32], strides = [1, 1]} : vector<8x128xf32> to vector<8x32xf32>
    %95 = vector.extract_strided_slice %91 {offsets = [0, 64], sizes = [8, 32], strides = [1, 1]} : vector<8x128xf32> to vector<8x32xf32>
    %96 = arith.mulf %93, %79 : vector<8x32xf32>
    %97 = arith.mulf %92, %95 : vector<8x32xf32>
    %98 = arith.addf %96, %97 : vector<8x32xf32>
    %99 = math.tanh %98 : vector<8x32xf32>
    %100 = arith.mulf %94, %99 : vector<8x32xf32>
    %c32_33 = arith.constant 32 : index
    %c0_34 = arith.constant 0 : index
    %101 = vector.load %arg10[%c32_33, %c0_34] : memref<64x32xf32, #tpu.memory_space<vmem>>, vector<8x32xf32>
    tpu.vector_store %arg10[%c32_33, %c0_34], %100 {strides = array<i32>} : memref<64x32xf32, #tpu.memory_space<vmem>>, vector<8x32xf32>,
    %c40 = arith.constant 40 : index
    %c0_35 = arith.constant 0 : index
    %102 = vector.load %arg12[%c40, %c0_35] : memref<64x128xf32, #tpu.memory_space<vmem>>, vector<8x128xf32>
    %cst_36 = arith.constant dense<0.000000e+00> : vector<8x128xf32>
    %103 = tpu.matmul %100, %1, %cst_36 {dimension_numbers = #tpu.dot_dimension_numbers<[1], [0], [0], [1], [0, 0, 1, 1], [], []>} : vector<8x32xf32>, vector<32x128xf32>, vector<8x128xf32> -> vector<8x128xf32>
    %104 = arith.addf %102, %103 : vector<8x128xf32>
    %105 = arith.negf %104 : vector<8x128xf32>
    %106 = math.exp %105 : vector<8x128xf32>
    %cst_37 = arith.constant 1.000000e+00 : f32
    %107 = vector.broadcast %cst_37 : f32 to vector<8x128xf32>
    %108 = arith.addf %107, %106 : vector<8x128xf32>
    %109 = arith.divf %107, %108 : vector<8x128xf32>
    %110 = math.tanh %104 : vector<8x128xf32>
    %111 = vector.extract_strided_slice %109 {offsets = [0, 0], sizes = [8, 32], strides = [1, 1]} : vector<8x128xf32> to vector<8x32xf32>
    %112 = vector.extract_strided_slice %109 {offsets = [0, 32], sizes = [8, 32], strides = [1, 1]} : vector<8x128xf32> to vector<8x32xf32>
    %113 = vector.extract_strided_slice %109 {offsets = [0, 96], sizes = [8, 32], strides = [1, 1]} : vector<8x128xf32> to vector<8x32xf32>
    %114 = vector.extract_strided_slice %110 {offsets = [0, 64], sizes = [8, 32], strides = [1, 1]} : vector<8x128xf32> to vector<8x32xf32>
    %115 = arith.mulf %112, %98 : vector<8x32xf32>
    %116 = arith.mulf %111, %114 : vector<8x32xf32>
    %117 = arith.addf %115, %116 : vector<8x32xf32>
    %118 = math.tanh %117 : vector<8x32xf32>
    %119 = arith.mulf %113, %118 : vector<8x32xf32>
    %c40_38 = arith.constant 40 : index
    %c0_39 = arith.constant 0 : index
    %120 = vector.load %arg10[%c40_38, %c0_39] : memref<64x32xf32, #tpu.memory_space<vmem>>, vector<8x32xf32>
    tpu.vector_store %arg10[%c40_38, %c0_39], %119 {strides = array<i32>} : memref<64x32xf32, #tpu.memory_space<vmem>>, vector<8x32xf32>,
    %c48 = arith.constant 48 : index
    %c0_40 = arith.constant 0 : index
    %121 = vector.load %arg12[%c48, %c0_40] : memref<64x128xf32, #tpu.memory_space<vmem>>, vector<8x128xf32>
    %cst_41 = arith.constant dense<0.000000e+00> : vector<8x128xf32>
    %122 = tpu.matmul %119, %1, %cst_41 {dimension_numbers = #tpu.dot_dimension_numbers<[1], [0], [0], [1], [0, 0, 1, 1], [], []>} : vector<8x32xf32>, vector<32x128xf32>, vector<8x128xf32> -> vector<8x128xf32>
    %123 = arith.addf %121, %122 : vector<8x128xf32>
    %124 = arith.negf %123 : vector<8x128xf32>
    %125 = math.exp %124 : vector<8x128xf32>
    %cst_42 = arith.constant 1.000000e+00 : f32
    %126 = vector.broadcast %cst_42 : f32 to vector<8x128xf32>
    %127 = arith.addf %126, %125 : vector<8x128xf32>
    %128 = arith.divf %126, %127 : vector<8x128xf32>
    %129 = math.tanh %123 : vector<8x128xf32>
    %130 = vector.extract_strided_slice %128 {offsets = [0, 0], sizes = [8, 32], strides = [1, 1]} : vector<8x128xf32> to vector<8x32xf32>
    %131 = vector.extract_strided_slice %128 {offsets = [0, 32], sizes = [8, 32], strides = [1, 1]} : vector<8x128xf32> to vector<8x32xf32>
    %132 = vector.extract_strided_slice %128 {offsets = [0, 96], sizes = [8, 32], strides = [1, 1]} : vector<8x128xf32> to vector<8x32xf32>
    %133 = vector.extract_strided_slice %129 {offsets = [0, 64], sizes = [8, 32], strides = [1, 1]} : vector<8x128xf32> to vector<8x32xf32>
    %134 = arith.mulf %131, %117 : vector<8x32xf32>
    %135 = arith.mulf %130, %133 : vector<8x32xf32>
    %136 = arith.addf %134, %135 : vector<8x32xf32>
    %137 = math.tanh %136 : vector<8x32xf32>
    %138 = arith.mulf %132, %137 : vector<8x32xf32>
    %c48_43 = arith.constant 48 : index
    %c0_44 = arith.constant 0 : index
    %139 = vector.load %arg10[%c48_43, %c0_44] : memref<64x32xf32, #tpu.memory_space<vmem>>, vector<8x32xf32>
    tpu.vector_store %arg10[%c48_43, %c0_44], %138 {strides = array<i32>} : memref<64x32xf32, #tpu.memory_space<vmem>>, vector<8x32xf32>,
    %c56 = arith.constant 56 : index
    %c0_45 = arith.constant 0 : index
    %140 = vector.load %arg12[%c56, %c0_45] : memref<64x128xf32, #tpu.memory_space<vmem>>, vector<8x128xf32>
    %cst_46 = arith.constant dense<0.000000e+00> : vector<8x128xf32>
    %141 = tpu.matmul %138, %1, %cst_46 {dimension_numbers = #tpu.dot_dimension_numbers<[1], [0], [0], [1], [0, 0, 1, 1], [], []>} : vector<8x32xf32>, vector<32x128xf32>, vector<8x128xf32> -> vector<8x128xf32>
    %142 = arith.addf %140, %141 : vector<8x128xf32>
    %143 = arith.negf %142 : vector<8x128xf32>
    %144 = math.exp %143 : vector<8x128xf32>
    %cst_47 = arith.constant 1.000000e+00 : f32
    %145 = vector.broadcast %cst_47 : f32 to vector<8x128xf32>
    %146 = arith.addf %145, %144 : vector<8x128xf32>
    %147 = arith.divf %145, %146 : vector<8x128xf32>
    %148 = math.tanh %142 : vector<8x128xf32>
    %149 = vector.extract_strided_slice %147 {offsets = [0, 0], sizes = [8, 32], strides = [1, 1]} : vector<8x128xf32> to vector<8x32xf32>
    %150 = vector.extract_strided_slice %147 {offsets = [0, 32], sizes = [8, 32], strides = [1, 1]} : vector<8x128xf32> to vector<8x32xf32>
    %151 = vector.extract_strided_slice %147 {offsets = [0, 96], sizes = [8, 32], strides = [1, 1]} : vector<8x128xf32> to vector<8x32xf32>
    %152 = vector.extract_strided_slice %148 {offsets = [0, 64], sizes = [8, 32], strides = [1, 1]} : vector<8x128xf32> to vector<8x32xf32>
    %153 = arith.mulf %150, %136 : vector<8x32xf32>
    %154 = arith.mulf %149, %152 : vector<8x32xf32>
    %155 = arith.addf %153, %154 : vector<8x32xf32>
    %156 = math.tanh %155 : vector<8x32xf32>
    %157 = arith.mulf %151, %156 : vector<8x32xf32>
    %c56_48 = arith.constant 56 : index
    %c0_49 = arith.constant 0 : index
    %158 = vector.load %arg10[%c56_48, %c0_49] : memref<64x32xf32, #tpu.memory_space<vmem>>, vector<8x32xf32>
    tpu.vector_store %arg10[%c56_48, %c0_49], %157 {strides = array<i32>} : memref<64x32xf32, #tpu.memory_space<vmem>>, vector<8x32xf32>,
    %c0_50 = arith.constant 0 : index
    %c0_51 = arith.constant 0 : index
    %159 = vector.load %arg4[%c0_50, %c0_51] : memref<32x128xf32, #tpu.memory_space<vmem>>, vector<32x128xf32>
    %c0_52 = arith.constant 0 : index
    %c0_53 = arith.constant 0 : index
    %160 = vector.load %arg5[%c0_52, %c0_53] : memref<32x128xf32, #tpu.memory_space<vmem>>, vector<32x128xf32>
    %c0_54 = arith.constant 0 : index
    %c0_55 = arith.constant 0 : index
    %161 = vector.load %arg6[%c0_54, %c0_55] : memref<1x128xf32, #tpu.memory_space<vmem>>, vector<1x128xf32>
    %c0_56 = arith.constant 0 : index
    %c0_57 = arith.constant 0 : index
    %162 = vector.load %arg10[%c0_56, %c0_57] : memref<64x32xf32, #tpu.memory_space<vmem>>, vector<64x32xf32>
    %cst_58 = arith.constant dense<0.000000e+00> : vector<64x128xf32>
    %163 = tpu.matmul %162, %159, %cst_58 {dimension_numbers = #tpu.dot_dimension_numbers<[1], [0], [0], [1], [0, 0, 1, 1], [], []>} : vector<64x32xf32>, vector<32x128xf32>, vector<64x128xf32> -> vector<64x128xf32>
    %164 = vector.broadcast %161 : vector<1x128xf32> to vector<64x128xf32>
    %165 = arith.addf %163, %164 : vector<64x128xf32>
    %c0_59 = arith.constant 0 : index
    %c0_60 = arith.constant 0 : index
    %166 = vector.load %arg12[%c0_59, %c0_60] : memref<64x128xf32, #tpu.memory_space<vmem>>, vector<64x128xf32>
    tpu.vector_store %arg12[%c0_59, %c0_60], %165 {strides = array<i32>} : memref<64x128xf32, #tpu.memory_space<vmem>>, vector<64x128xf32>,
    %cst_61 = arith.constant 0.000000e+00 : f32
    %167 = vector.broadcast %cst_61 : f32 to vector<8x32xf32>
    %c0_62 = arith.constant 0 : index
    %c0_63 = arith.constant 0 : index
    %168 = vector.load %arg12[%c0_62, %c0_63] : memref<64x128xf32, #tpu.memory_space<vmem>>, vector<8x128xf32>
    %169 = arith.negf %168 : vector<8x128xf32>
    %170 = math.exp %169 : vector<8x128xf32>
    %cst_64 = arith.constant 1.000000e+00 : f32
    %171 = vector.broadcast %cst_64 : f32 to vector<8x128xf32>
    %172 = arith.addf %171, %170 : vector<8x128xf32>
    %173 = arith.divf %171, %172 : vector<8x128xf32>
    %174 = math.tanh %168 : vector<8x128xf32>
    %175 = vector.extract_strided_slice %173 {offsets = [0, 0], sizes = [8, 32], strides = [1, 1]} : vector<8x128xf32> to vector<8x32xf32>
    %176 = vector.extract_strided_slice %173 {offsets = [0, 32], sizes = [8, 32], strides = [1, 1]} : vector<8x128xf32> to vector<8x32xf32>
    %177 = vector.extract_strided_slice %173 {offsets = [0, 96], sizes = [8, 32], strides = [1, 1]} : vector<8x128xf32> to vector<8x32xf32>
    %178 = vector.extract_strided_slice %174 {offsets = [0, 64], sizes = [8, 32], strides = [1, 1]} : vector<8x128xf32> to vector<8x32xf32>
    %179 = arith.mulf %176, %167 : vector<8x32xf32>
    %180 = arith.mulf %175, %178 : vector<8x32xf32>
    %181 = arith.addf %179, %180 : vector<8x32xf32>
    %182 = math.tanh %181 : vector<8x32xf32>
    %183 = arith.mulf %177, %182 : vector<8x32xf32>
    %c0_65 = arith.constant 0 : index
    %c0_66 = arith.constant 0 : index
    %184 = vector.load %arg11[%c0_65, %c0_66] : memref<64x32xf32, #tpu.memory_space<vmem>>, vector<8x32xf32>
    tpu.vector_store %arg11[%c0_65, %c0_66], %183 {strides = array<i32>} : memref<64x32xf32, #tpu.memory_space<vmem>>, vector<8x32xf32>,
    %c8_67 = arith.constant 8 : index
    %c0_68 = arith.constant 0 : index
    %185 = vector.load %arg12[%c8_67, %c0_68] : memref<64x128xf32, #tpu.memory_space<vmem>>, vector<8x128xf32>
    %cst_69 = arith.constant dense<0.000000e+00> : vector<8x128xf32>
    %186 = tpu.matmul %183, %160, %cst_69 {dimension_numbers = #tpu.dot_dimension_numbers<[1], [0], [0], [1], [0, 0, 1, 1], [], []>} : vector<8x32xf32>, vector<32x128xf32>, vector<8x128xf32> -> vector<8x128xf32>
    %187 = arith.addf %185, %186 : vector<8x128xf32>
    %188 = arith.negf %187 : vector<8x128xf32>
    %189 = math.exp %188 : vector<8x128xf32>
    %cst_70 = arith.constant 1.000000e+00 : f32
    %190 = vector.broadcast %cst_70 : f32 to vector<8x128xf32>
    %191 = arith.addf %190, %189 : vector<8x128xf32>
    %192 = arith.divf %190, %191 : vector<8x128xf32>
    %193 = math.tanh %187 : vector<8x128xf32>
    %194 = vector.extract_strided_slice %192 {offsets = [0, 0], sizes = [8, 32], strides = [1, 1]} : vector<8x128xf32> to vector<8x32xf32>
    %195 = vector.extract_strided_slice %192 {offsets = [0, 32], sizes = [8, 32], strides = [1, 1]} : vector<8x128xf32> to vector<8x32xf32>
    %196 = vector.extract_strided_slice %192 {offsets = [0, 96], sizes = [8, 32], strides = [1, 1]} : vector<8x128xf32> to vector<8x32xf32>
    %197 = vector.extract_strided_slice %193 {offsets = [0, 64], sizes = [8, 32], strides = [1, 1]} : vector<8x128xf32> to vector<8x32xf32>
    %198 = arith.mulf %195, %181 : vector<8x32xf32>
    %199 = arith.mulf %194, %197 : vector<8x32xf32>
    %200 = arith.addf %198, %199 : vector<8x32xf32>
    %201 = math.tanh %200 : vector<8x32xf32>
    %202 = arith.mulf %196, %201 : vector<8x32xf32>
    %c8_71 = arith.constant 8 : index
    %c0_72 = arith.constant 0 : index
    %203 = vector.load %arg11[%c8_71, %c0_72] : memref<64x32xf32, #tpu.memory_space<vmem>>, vector<8x32xf32>
    tpu.vector_store %arg11[%c8_71, %c0_72], %202 {strides = array<i32>} : memref<64x32xf32, #tpu.memory_space<vmem>>, vector<8x32xf32>,
    %c16_73 = arith.constant 16 : index
    %c0_74 = arith.constant 0 : index
    %204 = vector.load %arg12[%c16_73, %c0_74] : memref<64x128xf32, #tpu.memory_space<vmem>>, vector<8x128xf32>
    %cst_75 = arith.constant dense<0.000000e+00> : vector<8x128xf32>
    %205 = tpu.matmul %202, %160, %cst_75 {dimension_numbers = #tpu.dot_dimension_numbers<[1], [0], [0], [1], [0, 0, 1, 1], [], []>} : vector<8x32xf32>, vector<32x128xf32>, vector<8x128xf32> -> vector<8x128xf32>
    %206 = arith.addf %204, %205 : vector<8x128xf32>
    %207 = arith.negf %206 : vector<8x128xf32>
    %208 = math.exp %207 : vector<8x128xf32>
    %cst_76 = arith.constant 1.000000e+00 : f32
    %209 = vector.broadcast %cst_76 : f32 to vector<8x128xf32>
    %210 = arith.addf %209, %208 : vector<8x128xf32>
    %211 = arith.divf %209, %210 : vector<8x128xf32>
    %212 = math.tanh %206 : vector<8x128xf32>
    %213 = vector.extract_strided_slice %211 {offsets = [0, 0], sizes = [8, 32], strides = [1, 1]} : vector<8x128xf32> to vector<8x32xf32>
    %214 = vector.extract_strided_slice %211 {offsets = [0, 32], sizes = [8, 32], strides = [1, 1]} : vector<8x128xf32> to vector<8x32xf32>
    %215 = vector.extract_strided_slice %211 {offsets = [0, 96], sizes = [8, 32], strides = [1, 1]} : vector<8x128xf32> to vector<8x32xf32>
    %216 = vector.extract_strided_slice %212 {offsets = [0, 64], sizes = [8, 32], strides = [1, 1]} : vector<8x128xf32> to vector<8x32xf32>
    %217 = arith.mulf %214, %200 : vector<8x32xf32>
    %218 = arith.mulf %213, %216 : vector<8x32xf32>
    %219 = arith.addf %217, %218 : vector<8x32xf32>
    %220 = math.tanh %219 : vector<8x32xf32>
    %221 = arith.mulf %215, %220 : vector<8x32xf32>
    %c16_77 = arith.constant 16 : index
    %c0_78 = arith.constant 0 : index
    %222 = vector.load %arg11[%c16_77, %c0_78] : memref<64x32xf32, #tpu.memory_space<vmem>>, vector<8x32xf32>
    tpu.vector_store %arg11[%c16_77, %c0_78], %221 {strides = array<i32>} : memref<64x32xf32, #tpu.memory_space<vmem>>, vector<8x32xf32>,
    %c24_79 = arith.constant 24 : index
    %c0_80 = arith.constant 0 : index
    %223 = vector.load %arg12[%c24_79, %c0_80] : memref<64x128xf32, #tpu.memory_space<vmem>>, vector<8x128xf32>
    %cst_81 = arith.constant dense<0.000000e+00> : vector<8x128xf32>
    %224 = tpu.matmul %221, %160, %cst_81 {dimension_numbers = #tpu.dot_dimension_numbers<[1], [0], [0], [1], [0, 0, 1, 1], [], []>} : vector<8x32xf32>, vector<32x128xf32>, vector<8x128xf32> -> vector<8x128xf32>
    %225 = arith.addf %223, %224 : vector<8x128xf32>
    %226 = arith.negf %225 : vector<8x128xf32>
    %227 = math.exp %226 : vector<8x128xf32>
    %cst_82 = arith.constant 1.000000e+00 : f32
    %228 = vector.broadcast %cst_82 : f32 to vector<8x128xf32>
    %229 = arith.addf %228, %227 : vector<8x128xf32>
    %230 = arith.divf %228, %229 : vector<8x128xf32>
    %231 = math.tanh %225 : vector<8x128xf32>
    %232 = vector.extract_strided_slice %230 {offsets = [0, 0], sizes = [8, 32], strides = [1, 1]} : vector<8x128xf32> to vector<8x32xf32>
    %233 = vector.extract_strided_slice %230 {offsets = [0, 32], sizes = [8, 32], strides = [1, 1]} : vector<8x128xf32> to vector<8x32xf32>
    %234 = vector.extract_strided_slice %230 {offsets = [0, 96], sizes = [8, 32], strides = [1, 1]} : vector<8x128xf32> to vector<8x32xf32>
    %235 = vector.extract_strided_slice %231 {offsets = [0, 64], sizes = [8, 32], strides = [1, 1]} : vector<8x128xf32> to vector<8x32xf32>
    %236 = arith.mulf %233, %219 : vector<8x32xf32>
    %237 = arith.mulf %232, %235 : vector<8x32xf32>
    %238 = arith.addf %236, %237 : vector<8x32xf32>
    %239 = math.tanh %238 : vector<8x32xf32>
    %240 = arith.mulf %234, %239 : vector<8x32xf32>
    %c24_83 = arith.constant 24 : index
    %c0_84 = arith.constant 0 : index
    %241 = vector.load %arg11[%c24_83, %c0_84] : memref<64x32xf32, #tpu.memory_space<vmem>>, vector<8x32xf32>
    tpu.vector_store %arg11[%c24_83, %c0_84], %240 {strides = array<i32>} : memref<64x32xf32, #tpu.memory_space<vmem>>, vector<8x32xf32>,
    %c32_85 = arith.constant 32 : index
    %c0_86 = arith.constant 0 : index
    %242 = vector.load %arg12[%c32_85, %c0_86] : memref<64x128xf32, #tpu.memory_space<vmem>>, vector<8x128xf32>
    %cst_87 = arith.constant dense<0.000000e+00> : vector<8x128xf32>
    %243 = tpu.matmul %240, %160, %cst_87 {dimension_numbers = #tpu.dot_dimension_numbers<[1], [0], [0], [1], [0, 0, 1, 1], [], []>} : vector<8x32xf32>, vector<32x128xf32>, vector<8x128xf32> -> vector<8x128xf32>
    %244 = arith.addf %242, %243 : vector<8x128xf32>
    %245 = arith.negf %244 : vector<8x128xf32>
    %246 = math.exp %245 : vector<8x128xf32>
    %cst_88 = arith.constant 1.000000e+00 : f32
    %247 = vector.broadcast %cst_88 : f32 to vector<8x128xf32>
    %248 = arith.addf %247, %246 : vector<8x128xf32>
    %249 = arith.divf %247, %248 : vector<8x128xf32>
    %250 = math.tanh %244 : vector<8x128xf32>
    %251 = vector.extract_strided_slice %249 {offsets = [0, 0], sizes = [8, 32], strides = [1, 1]} : vector<8x128xf32> to vector<8x32xf32>
    %252 = vector.extract_strided_slice %249 {offsets = [0, 32], sizes = [8, 32], strides = [1, 1]} : vector<8x128xf32> to vector<8x32xf32>
    %253 = vector.extract_strided_slice %249 {offsets = [0, 96], sizes = [8, 32], strides = [1, 1]} : vector<8x128xf32> to vector<8x32xf32>
    %254 = vector.extract_strided_slice %250 {offsets = [0, 64], sizes = [8, 32], strides = [1, 1]} : vector<8x128xf32> to vector<8x32xf32>
    %255 = arith.mulf %252, %238 : vector<8x32xf32>
    %256 = arith.mulf %251, %254 : vector<8x32xf32>
    %257 = arith.addf %255, %256 : vector<8x32xf32>
    %258 = math.tanh %257 : vector<8x32xf32>
    %259 = arith.mulf %253, %258 : vector<8x32xf32>
    %c32_89 = arith.constant 32 : index
    %c0_90 = arith.constant 0 : index
    %260 = vector.load %arg11[%c32_89, %c0_90] : memref<64x32xf32, #tpu.memory_space<vmem>>, vector<8x32xf32>
    tpu.vector_store %arg11[%c32_89, %c0_90], %259 {strides = array<i32>} : memref<64x32xf32, #tpu.memory_space<vmem>>, vector<8x32xf32>,
    %c40_91 = arith.constant 40 : index
    %c0_92 = arith.constant 0 : index
    %261 = vector.load %arg12[%c40_91, %c0_92] : memref<64x128xf32, #tpu.memory_space<vmem>>, vector<8x128xf32>
    %cst_93 = arith.constant dense<0.000000e+00> : vector<8x128xf32>
    %262 = tpu.matmul %259, %160, %cst_93 {dimension_numbers = #tpu.dot_dimension_numbers<[1], [0], [0], [1], [0, 0, 1, 1], [], []>} : vector<8x32xf32>, vector<32x128xf32>, vector<8x128xf32> -> vector<8x128xf32>
    %263 = arith.addf %261, %262 : vector<8x128xf32>
    %264 = arith.negf %263 : vector<8x128xf32>
    %265 = math.exp %264 : vector<8x128xf32>
    %cst_94 = arith.constant 1.000000e+00 : f32
    %266 = vector.broadcast %cst_94 : f32 to vector<8x128xf32>
    %267 = arith.addf %266, %265 : vector<8x128xf32>
    %268 = arith.divf %266, %267 : vector<8x128xf32>
    %269 = math.tanh %263 : vector<8x128xf32>
    %270 = vector.extract_strided_slice %268 {offsets = [0, 0], sizes = [8, 32], strides = [1, 1]} : vector<8x128xf32> to vector<8x32xf32>
    %271 = vector.extract_strided_slice %268 {offsets = [0, 32], sizes = [8, 32], strides = [1, 1]} : vector<8x128xf32> to vector<8x32xf32>
    %272 = vector.extract_strided_slice %268 {offsets = [0, 96], sizes = [8, 32], strides = [1, 1]} : vector<8x128xf32> to vector<8x32xf32>
    %273 = vector.extract_strided_slice %269 {offsets = [0, 64], sizes = [8, 32], strides = [1, 1]} : vector<8x128xf32> to vector<8x32xf32>
    %274 = arith.mulf %271, %257 : vector<8x32xf32>
    %275 = arith.mulf %270, %273 : vector<8x32xf32>
    %276 = arith.addf %274, %275 : vector<8x32xf32>
    %277 = math.tanh %276 : vector<8x32xf32>
    %278 = arith.mulf %272, %277 : vector<8x32xf32>
    %c40_95 = arith.constant 40 : index
    %c0_96 = arith.constant 0 : index
    %279 = vector.load %arg11[%c40_95, %c0_96] : memref<64x32xf32, #tpu.memory_space<vmem>>, vector<8x32xf32>
    tpu.vector_store %arg11[%c40_95, %c0_96], %278 {strides = array<i32>} : memref<64x32xf32, #tpu.memory_space<vmem>>, vector<8x32xf32>,
    %c48_97 = arith.constant 48 : index
    %c0_98 = arith.constant 0 : index
    %280 = vector.load %arg12[%c48_97, %c0_98] : memref<64x128xf32, #tpu.memory_space<vmem>>, vector<8x128xf32>
    %cst_99 = arith.constant dense<0.000000e+00> : vector<8x128xf32>
    %281 = tpu.matmul %278, %160, %cst_99 {dimension_numbers = #tpu.dot_dimension_numbers<[1], [0], [0], [1], [0, 0, 1, 1], [], []>} : vector<8x32xf32>, vector<32x128xf32>, vector<8x128xf32> -> vector<8x128xf32>
    %282 = arith.addf %280, %281 : vector<8x128xf32>
    %283 = arith.negf %282 : vector<8x128xf32>
    %284 = math.exp %283 : vector<8x128xf32>
    %cst_100 = arith.constant 1.000000e+00 : f32
    %285 = vector.broadcast %cst_100 : f32 to vector<8x128xf32>
    %286 = arith.addf %285, %284 : vector<8x128xf32>
    %287 = arith.divf %285, %286 : vector<8x128xf32>
    %288 = math.tanh %282 : vector<8x128xf32>
    %289 = vector.extract_strided_slice %287 {offsets = [0, 0], sizes = [8, 32], strides = [1, 1]} : vector<8x128xf32> to vector<8x32xf32>
    %290 = vector.extract_strided_slice %287 {offsets = [0, 32], sizes = [8, 32], strides = [1, 1]} : vector<8x128xf32> to vector<8x32xf32>
    %291 = vector.extract_strided_slice %287 {offsets = [0, 96], sizes = [8, 32], strides = [1, 1]} : vector<8x128xf32> to vector<8x32xf32>
    %292 = vector.extract_strided_slice %288 {offsets = [0, 64], sizes = [8, 32], strides = [1, 1]} : vector<8x128xf32> to vector<8x32xf32>
    %293 = arith.mulf %290, %276 : vector<8x32xf32>
    %294 = arith.mulf %289, %292 : vector<8x32xf32>
    %295 = arith.addf %293, %294 : vector<8x32xf32>
    %296 = math.tanh %295 : vector<8x32xf32>
    %297 = arith.mulf %291, %296 : vector<8x32xf32>
    %c48_101 = arith.constant 48 : index
    %c0_102 = arith.constant 0 : index
    %298 = vector.load %arg11[%c48_101, %c0_102] : memref<64x32xf32, #tpu.memory_space<vmem>>, vector<8x32xf32>
    tpu.vector_store %arg11[%c48_101, %c0_102], %297 {strides = array<i32>} : memref<64x32xf32, #tpu.memory_space<vmem>>, vector<8x32xf32>,
    %c56_103 = arith.constant 56 : index
    %c0_104 = arith.constant 0 : index
    %299 = vector.load %arg12[%c56_103, %c0_104] : memref<64x128xf32, #tpu.memory_space<vmem>>, vector<8x128xf32>
    %cst_105 = arith.constant dense<0.000000e+00> : vector<8x128xf32>
    %300 = tpu.matmul %297, %160, %cst_105 {dimension_numbers = #tpu.dot_dimension_numbers<[1], [0], [0], [1], [0, 0, 1, 1], [], []>} : vector<8x32xf32>, vector<32x128xf32>, vector<8x128xf32> -> vector<8x128xf32>
    %301 = arith.addf %299, %300 : vector<8x128xf32>
    %302 = arith.negf %301 : vector<8x128xf32>
    %303 = math.exp %302 : vector<8x128xf32>
    %cst_106 = arith.constant 1.000000e+00 : f32
    %304 = vector.broadcast %cst_106 : f32 to vector<8x128xf32>
    %305 = arith.addf %304, %303 : vector<8x128xf32>
    %306 = arith.divf %304, %305 : vector<8x128xf32>
    %307 = math.tanh %301 : vector<8x128xf32>
    %308 = vector.extract_strided_slice %306 {offsets = [0, 0], sizes = [8, 32], strides = [1, 1]} : vector<8x128xf32> to vector<8x32xf32>
    %309 = vector.extract_strided_slice %306 {offsets = [0, 32], sizes = [8, 32], strides = [1, 1]} : vector<8x128xf32> to vector<8x32xf32>
    %310 = vector.extract_strided_slice %306 {offsets = [0, 96], sizes = [8, 32], strides = [1, 1]} : vector<8x128xf32> to vector<8x32xf32>
    %311 = vector.extract_strided_slice %307 {offsets = [0, 64], sizes = [8, 32], strides = [1, 1]} : vector<8x128xf32> to vector<8x32xf32>
    %312 = arith.mulf %309, %295 : vector<8x32xf32>
    %313 = arith.mulf %308, %311 : vector<8x32xf32>
    %314 = arith.addf %312, %313 : vector<8x32xf32>
    %315 = math.tanh %314 : vector<8x32xf32>
    %316 = arith.mulf %310, %315 : vector<8x32xf32>
    %c56_107 = arith.constant 56 : index
    %c0_108 = arith.constant 0 : index
    %317 = vector.load %arg11[%c56_107, %c0_108] : memref<64x32xf32, #tpu.memory_space<vmem>>, vector<8x32xf32>
    tpu.vector_store %arg11[%c56_107, %c0_108], %316 {strides = array<i32>} : memref<64x32xf32, #tpu.memory_space<vmem>>, vector<8x32xf32>,
    %c0_109 = arith.constant 0 : index
    %c0_110 = arith.constant 0 : index
    %318 = vector.load %arg11[%c0_109, %c0_110] : memref<64x32xf32, #tpu.memory_space<vmem>>, vector<64x32xf32>
    %cst_111 = arith.constant 0.000000e+00 : f32
    %319 = vector.broadcast %cst_111 : f32 to vector<64x32xf32>
    %320 = arith.maximumf %318, %319 : vector<64x32xf32>
    %c0_112 = arith.constant 0 : index
    %c0_113 = arith.constant 0 : index
    %321 = vector.load %arg7[%c0_112, %c0_113] : memref<32x8xf32, #tpu.memory_space<vmem>>, vector<32x8xf32>
    %cst_114 = arith.constant dense<0.000000e+00> : vector<64x8xf32>
    %322 = tpu.matmul %320, %321, %cst_114 {dimension_numbers = #tpu.dot_dimension_numbers<[1], [0], [0], [1], [0, 0, 1, 1], [], []>} : vector<64x32xf32>, vector<32x8xf32>, vector<64x8xf32> -> vector<64x8xf32>
    %c0_115 = arith.constant 0 : index
    %c0_116 = arith.constant 0 : index
    %323 = vector.load %arg8[%c0_115, %c0_116] : memref<1x8xf32, #tpu.memory_space<vmem>>, vector<1x8xf32>
    %324 = vector.broadcast %323 : vector<1x8xf32> to vector<64x8xf32>
    %325 = arith.addf %322, %324 : vector<64x8xf32>
    %c0_117 = arith.constant 0 : index
    %c0_118 = arith.constant 0 : index
    %326 = vector.load %arg9[%c0_117, %c0_118] : memref<64x8xf32, #tpu.memory_space<vmem>>, vector<64x8xf32>
    tpu.vector_store %arg9[%c0_117, %c0_118], %325 {strides = array<i32>} : memref<64x8xf32, #tpu.memory_space<vmem>>, vector<64x8xf32>,
    return
  }
}

</mosaic_0001>

<bundles_post_ra>
// kernel: tpu_custom_call.1
= control target key start
LH: loop header
LB: loop body
LE: loop exit
PB: predicated region body
PF: predicated region fallthrough
CT: control target
= control target key end

     0   :  { %vm53_vm0 = vcmask 130048   ;;  %v2635_v22 = vmov 0.0|0.0   ;;  %vm2636_vm1 = vmmov 0   ;;  %v2637_v30 = vmov 0.0   ;;  %s3099_s1 = inlined_call_operand.vmem [shape: f32[16,128], index: 1, kind: input, shape index: {}]   ;;  %s3100_s0 = inlined_call_operand.vmem [shape: f32[64,16], index: 0, kind: input, shape index: {}]   ;;  %s3101_s3 = inlined_call_operand.vmem [shape: f32[1,128], index: 3, kind: input, shape index: {}]   ;;  %s3102_s2 = inlined_call_operand.vmem [shape: f32[32,128], index: 2, kind: input, shape index: {}]   ;;  %s3103_s4 = inlined_call_operand.vmem [shape: f32[32,128], index: 4, kind: input, shape index: {}]   ;;  %s3104_s6 = inlined_call_operand.vmem [shape: f32[1,128], index: 6, kind: input, shape index: {}]   ;;  %s3105_s5 = inlined_call_operand.vmem [shape: f32[32,128], index: 5, kind: input, shape index: {}]   ;;  %s3106_s7 = inlined_call_operand.vmem [shape: f32[32,8], index: 7, kind: input, shape index: {}]   ;;  %s3107_s8 = inlined_call_operand.vmem [shape: f32[1,8], index: 8, kind: input, shape index: {}]   ;;  %s3108_s9 = inlined_call_operand.vmem [shape: f32[64,8], index: 9, kind: output, shape index: {}]  }
   0x1   :  { %v32_v0 = vld [vmem:[%s3099_s1] sm:$0xff]  ;;  %v33_v1 = vld [vmem:[%s3099_s1 + $0x8] sm:$0xff]  ;;  %s2633_s1 = smov 64   ;;  %v45_v21 = vld [vmem:[%s3100_s0 + $0x30] sm:$0xff]  ;;  %vm220_vm2 = vcmask 261120   ;;  %vm2010_vm3 = vcmask 64512  }
   0x2   :  { %v39_v2 = vld [vmem:[%s3100_s0] sm:$0xff]  ;;  %v2394_v3 = vpack.c.bf16 %v33_v1, %v32_v0  ;;  %v40_v4 = vld [vmem:[%s3100_s0 + $0x8] sm:$0xff]  ;;  %v36_v26 = vld [vmem:[%s3102_s2 + $0x10] sm:$0xff] }
   0x3   :  { %2188 = vmatprep.mubr.msk.f32.mxu0 %vm53_vm0, %v39_v2  ;;  %v2705_v5 = vld [vmem:[%s3101_s3] ss:$0 sm:$0xff]  ;;  %s2634_s3 = smov 32   ;;  %v44_v20 = vld [vmem:[%s3100_s0 + $0x28] sm:$0xff]  ;;  %v37_v27 = vld [vmem:[%s3102_s2 + $0x18] sm:$0xff] }
   0x4   :  { %2395 = vmatprep.subr.bf16.mxu0 %v2394_v3  ;;  %2498 = vmatprep.subr.bf16.mxu1 %v2394_v3  ;;  %v43_v19 = vld [vmem:[%s3100_s0 + $0x20] sm:$0xff]  ;;  %v35_v24 = vld [vmem:[%s3102_s2 + $0x8] sm:$0xff]  ;;  %v46_v28 = vld [vmem:[%s3100_s0 + $0x38] sm:$0xff]  ;;  %v2747_v29 = vpack.c.bf16 %v37_v27, %v36_v26 }
   0x5   :  { %2397 = vmatpush3.bf16.msra.mxu0 %v2394_v3  ;;  %2499 = vmatpush3.bf16.msra.mxu1 %v2394_v3  ;;  %v34_v23 = vld [vmem:[%s3102_s2] sm:$0xff]  ;;  %v41_v53 = vld [vmem:[%s3100_s0 + $0x10] sm:$0xff]  ;;  %v42_v54 = vld [vmem:[%s3100_s0 + $0x18] sm:$0xff] }
   0x6   :  { %2194 = vmatprep.mubr.msk.f32.mxu1 %vm53_vm0, %v43_v19  ;;  %2398 = vmatprep.subr.bf16.mxu1 %v2635_v22  ;;  %v2733_v25 = vpack.c.bf16 %v35_v24, %v34_v23 }
   0x7   :  { %2410 = vmatprep.subr.bf16.mxu0 %v2635_v22 }
   0x8   :  { %2189 = vmatmul.mubr.msk.f32.vlgmr.msra.gmra.mrb[0].mxu0 %vm53_vm0, %v40_v4  ;;  %2195 = vmatmul.mubr.msk.f32.vlgmr.msra.gmra.mrb[0].mxu1 %vm53_vm0, %v44_v20 }
   0x9   :  { %2197 = vmatprep.mubr.msk.f32.mxu1 %vm53_vm0, %v45_v21  ;;  %2400 = vmatpush3.bf16.msra.mxu1 %v2733_v25 }
   0xa   :  { %2412 = vmatpush3.bf16.msra.mxu0 %v2733_v25  ;;  %2401 = vmatprep.subr.bf16.mxu1 %v2635_v22 }
   0xb   :  { %2413 = vmatprep.subr.bf16.mxu0 %v2635_v22  ;;  %2191 = vmatprep.mubr.msk.f32.mxu0 %vm53_vm0, %v41_v53 }
   0xc   :  { %2198 = vmatmul.mubr.msk.f32.gmra.mrb[2].mxu1 %vm53_vm0, %v46_v28  ;;  %2192 = vmatmul.mubr.msk.f32.gmra.mrb[2].mxu0 %vm53_vm0, %v42_v54 }
   0xd   :  { %2208 = vmatprep.mubr.msk.f32.mxu1 %vm2636_vm1, %v2637_v30  ;;  %2403 = vmatpush3.bf16.msra.mxu1 %v2747_v29 }
   0xe   :  { %2415 = vmatpush3.bf16.msra.mxu0 %v2747_v29  ;;  %2404 = vmatprep.subr.bf16.mxu1 %v2635_v22 }
   0xf   :  { %2422 = vmatprep.subr.bf16.mxu0 %v2635_v22  ;;  %2230 = vmatprep.mubr.msk.f32.mxu0 %vm2636_vm1, %v2637_v30 }
  0xdb   :  { %v2707_v6 = vpop.f32.mrb[0].mxu0  ;;  %v2761_v34 = vpop.f32.mrb[0].mxu1 }
  0xdc   :  { %v144_v7 = vpop.f32.mrb[1].mxu0  ;;  %v2763_v35 = vpop.f32.mrb[1].mxu1  ;;  %v150_v39 = vadd.f32 %v2707_v6, %v2705_v5 }
  0xdd   :  { %v145_v8 = vadd.f32 %v2705_v5, %v144_v7 }
  0xdf   :  { %2505 = vtanh.f32 %v145_v8  ;;  %v2032_v10 = vmul.f32 -1.442695, %v145_v8  ;;  %v2765_v36 = vpop.f32.mrb[2].mxu1  ;;  %v2193_v58 = vpop.f32.mrb[2].mxu0 }
  0xe0   :  { %v2767_v37 = vpop.f32.mrb[3].mxu1  ;;  %v154_v59 = vpop.f32.mrb[3].mxu0 }
  0xe1   :  { %2507 = vpow2.f32 %v2032_v10  ;;  %v155_v61 = vadd.f32 %v2705_v5, %v154_v59  ;;  %v170_v59 = vadd.f32 %v2761_v34, %v2705_v5 }
  0xe9   :  { %v2506_v9 = vpop.eup %2505 }
  0xea   :  { %201 = vrot.lane.b32.xlu0 %v2506_v9, %s2633_s1 }
  0xeb   :  { %v2508_v11 = vpop.eup %2507 }
  0xec   :  { %v195_v12 = vadd.f32 1.0, %v2508_v11 }
  0xee   :  { %2509 = vrcp.f32 %v195_v12 }
  0xf8   :  { %v2510_v13 = vpop.eup %2509 }
  0xf9   :  { %v199_v16 = vmul.f32 0.0, %v2510_v13 }
 0x15c   :  { %v202_v14 = vpop.permute.xlu0 %201 }
 0x15d   :  { %v204_v15 = vmul.f32 %v2510_v13, %v202_v14 }
 0x15f   :  { %206 = vrot.lane.b32.xlu0 %v204_v15, %s2634_s3 }
 0x1d1   :  { %v207_v17 = vpop.permute.xlu0 %206 }
 0x1d2   :  { %v2712_v18 = vadd.f32 %v207_v17, %v199_v16  ;;  %v160_v16 = vadd.f32 %v2193_v58, %v2705_v5 }
 0x1d4   :  { %2511 = vtanh.f32 %v2712_v18 }
 0x1de   :  { %v2512_v31 = vpop.eup %2511 }
 0x1df   :  { %212 = vrot.lane.b32.xlu1 %v2512_v31, %s2633_s1 }
 0x251   :  { %v213_v32 = vpop.permute.xlu1 %212 }
 0x252   :  { %v215_v33 = vmul.f32 %v2510_v13, %v213_v32 }
 0x254   :  { %217 = vrot.lane.b32.xlu1 %v215_v33, %s2634_s3 }
 0x2c6   :  { %v218_v38 = vpop.permute.xlu1 %217 }
 0x2c7   :  { %221 = vst.msk [vmem:[#allocation2] sm:$0xff] %vm220_vm2, %v218_v38  ;;  %2209 = vmatmul.mubr.msk.f32.vlgmr.msra.gmra.mrb[4].mxu1 %vm220_vm2, %v218_v38 }
 0x2c8   :  { %2406 = vmatpush3.bf16.msra.mxu1 %v2733_v25  ;;  %2219 = vmatprep.mubr.msk.f32.mxu1 %vm2636_vm1, %v2637_v30 }
 0x2c9   :  { %2407 = vmatprep.subr.bf16.mxu1 %v2635_v22 }
 0x2cc   :  { %2409 = vmatpush3.bf16.msra.mxu1 %v2747_v29 }
 0x2cd   :  { %2416 = vmatprep.subr.bf16.mxu1 %v2635_v22 }
 0x39a   :  { %v291_v40 = vpop.f32.mrb[4].mxu1 }
 0x39b   :  { %v295_v41 = vadd.f32 %v291_v40, %v150_v39  ;;  %v2210_v42 = vpop.f32.mrb[5].mxu1 }
 0x39c   :  { %v165_v42 = vadd.f32 %v2705_v5, %v2763_v35 }
 0x39d   :  { %2513 = vtanh.f32 %v295_v41  ;;  %v2034_v44 = vmul.f32 -1.442695, %v295_v41 }
 0x39f   :  { %2515 = vpow2.f32 %v2034_v44 }
 0x3a7   :  { %v2514_v43 = vpop.eup %2513 }
 0x3a8   :  { %305 = vrot.lane.b32.xlu0 %v2514_v43, %s2633_s1 }
 0x3a9   :  { %v2516_v45 = vpop.eup %2515 }
 0x3aa   :  { %v299_v46 = vadd.f32 1.0, %v2516_v45 }
 0x3ac   :  { %2517 = vrcp.f32 %v299_v46 }
 0x3b6   :  { %v2518_v47 = vpop.eup %2517 }
 0x3b7   :  { %v303_v50 = vmul.f32 %v2518_v47, %v2712_v18 }
 0x41a   :  { %v306_v48 = vpop.permute.xlu0 %305 }
 0x41b   :  { %v308_v49 = vmul.f32 %v2518_v47, %v306_v48 }
 0x41d   :  { %310 = vrot.lane.b32.xlu1 %v308_v49, %s2634_s3 }
 0x48f   :  { %v311_v51 = vpop.permute.xlu1 %310 }
 0x490   :  { %v313_v52 = vadd.f32 %v311_v51, %v303_v50 }
 0x492   :  { %2519 = vtanh.f32 %v313_v52 }
 0x49c   :  { %v2520_v55 = vpop.eup %2519 }
 0x49d   :  { %316 = vrot.lane.b32.xlu0 %v2520_v55, %s2633_s1 }
 0x50f   :  { %v317_v56 = vpop.permute.xlu0 %316 }
 0x510   :  { %v319_v57 = vmul.f32 %v2518_v47, %v317_v56 }
 0x512   :  { %321 = vrot.lane.b32.xlu1 %v319_v57, %s2634_s3 }
 0x584   :  { %v322_v60 = vpop.permute.xlu1 %321 }
 0x585   :  { %324 = vst.msk [vmem:[#allocation2 + $0x8] sm:$0xff] %vm220_vm2, %v322_v60  ;;  %2220 = vmatmul.mubr.msk.f32.vlgmr.msra.gmra.mrb[6].mxu1 %vm220_vm2, %v322_v60 }
 0x586   :  { %2418 = vmatpush3.bf16.msra.mxu1 %v2733_v25  ;;  %2241 = vmatprep.mubr.msk.f32.mxu1 %vm2636_vm1, %v2637_v30 }
 0x587   :  { %2419 = vmatprep.subr.bf16.mxu1 %v2635_v22 }
 0x58a   :  { %2421 = vmatpush3.bf16.msra.mxu1 %v2747_v29 }
 0x58b   :  { %2428 = vmatprep.subr.bf16.mxu1 %v2635_v22 }
 0x658   :  { %v394_v62 = vpop.f32.mrb[6].mxu1 }
 0x659   :  { %v398_v63 = vadd.f32 %v394_v62, %v155_v61  ;;  %v2221_v0 = vpop.f32.mrb[7].mxu1 }
 0x65b   :  { %2521 = vtanh.f32 %v398_v63  ;;  %v2036_v2 = vmul.f32 -1.442695, %v398_v63 }
 0x65d   :  { %2523 = vpow2.f32 %v2036_v2 }
 0x665   :  { %v2522_v1 = vpop.eup %2521 }
 0x666   :  { %408 = vrot.lane.b32.xlu0 %v2522_v1, %s2633_s1 }
 0x667   :  { %v2524_v3 = vpop.eup %2523 }
 0x668   :  { %v402_v4 = vadd.f32 1.0, %v2524_v3 }
 0x66a   :  { %2525 = vrcp.f32 %v402_v4 }
 0x674   :  { %v2526_v6 = vpop.eup %2525 }
 0x675   :  { %v406_v9 = vmul.f32 %v2526_v6, %v313_v52 }
 0x6d8   :  { %v409_v7 = vpop.permute.xlu0 %408 }
 0x6d9   :  { %v411_v8 = vmul.f32 %v2526_v6, %v409_v7  ;;  %v943_v7 = vld [vmem:[%s3103_s4] sm:$0xff] }
 0x6db   :  { %413 = vrot.lane.b32.xlu1 %v411_v8, %s2634_s3  ;;  %v944_v8 = vld [vmem:[%s3103_s4 + $0x8] sm:$0xff] }
 0x74d   :  { %v414_v10 = vpop.permute.xlu1 %413 }
 0x74e   :  { %v416_v11 = vadd.f32 %v414_v10, %v406_v9  ;;  %v2440_v9 = vpack.c.bf16 %v944_v8, %v943_v7 }
 0x750   :  { %2527 = vtanh.f32 %v416_v11 }
 0x75a   :  { %v2528_v12 = vpop.eup %2527 }
 0x75b   :  { %419 = vrot.lane.b32.xlu0 %v2528_v12, %s2633_s1 }
 0x7cd   :  { %v420_v13 = vpop.permute.xlu0 %419 }
 0x7ce   :  { %v422_v14 = vmul.f32 %v2526_v6, %v420_v13  ;;  %v945_v13 = vld [vmem:[%s3103_s4 + $0x10] sm:$0xff] }
 0x7d0   :  { %424 = vrot.lane.b32.xlu1 %v422_v14, %s2634_s3  ;;  %v946_v14 = vld [vmem:[%s3103_s4 + $0x18] sm:$0xff] }
 0x842   :  { %v425_v15 = vpop.permute.xlu1 %424 }
 0x843   :  { %427 = vst.msk [vmem:[#allocation2 + $0x10] sm:$0xff] %vm220_vm2, %v425_v15  ;;  %2231 = vmatmul.mubr.msk.f32.vlgmr.msra.gmra.mrb[4].mxu0 %vm220_vm2, %v425_v15  ;;  %v2444_v15 = vpack.c.bf16 %v946_v14, %v945_v13 }
 0x844   :  { %2424 = vmatpush3.bf16.msra.mxu0 %v2733_v25  ;;  %2252 = vmatprep.mubr.msk.f32.mxu0 %vm2636_vm1, %v2637_v30 }
 0x845   :  { %2425 = vmatprep.subr.bf16.mxu0 %v2635_v22 }
 0x848   :  { %2427 = vmatpush3.bf16.msra.mxu0 %v2747_v29 }
 0x849   :  { %2434 = vmatprep.subr.bf16.mxu0 %v2635_v22 }
 0x916   :  { %v497_v17 = vpop.f32.mrb[4].mxu0 }
 0x917   :  { %v501_v18 = vadd.f32 %v497_v17, %v160_v16  ;;  %v2232_v19 = vpop.f32.mrb[5].mxu0  ;;  %v952_v17 = vld [vmem:[#allocation2] sm:$0xff] }
 0x918   :  { %v954_v19 = vld [vmem:[#allocation2 + $0x10] sm:$0xff] }
 0x919   :  { %2529 = vtanh.f32 %v501_v18  ;;  %v2038_v21 = vmul.f32 -1.442695, %v501_v18  ;;  %v953_v18 = vld [vmem:[#allocation2 + $0x8] sm:$0xff] }
 0x91b   :  { %2531 = vpow2.f32 %v2038_v21 }
 0x923   :  { %v2530_v20 = vpop.eup %2529 }
 0x924   :  { %511 = vrot.lane.b32.xlu0 %v2530_v20, %s2633_s1 }
 0x925   :  { %v2532_v23 = vpop.eup %2531 }
 0x926   :  { %v505_v24 = vadd.f32 1.0, %v2532_v23 }
 0x928   :  { %2533 = vrcp.f32 %v505_v24  ;;  %v175_v24 = vadd.f32 %v2705_v5, %v2767_v37 }
 0x932   :  { %v2534_v26 = vpop.eup %2533 }
 0x933   :  { %v509_v31 = vmul.f32 %v2534_v26, %v416_v11 }
 0x996   :  { %v512_v27 = vpop.permute.xlu0 %511 }
 0x997   :  { %v514_v28 = vmul.f32 %v2534_v26, %v512_v27 }
 0x999   :  { %516 = vrot.lane.b32.xlu1 %v514_v28, %s2634_s3 }
 0xa0b   :  { %v517_v32 = vpop.permute.xlu1 %516 }
 0xa0c   :  { %v519_v33 = vadd.f32 %v517_v32, %v509_v31  ;;  %v2876_v31 = vld [vmem:[%s3104_s6] ss:$0 sm:$0xff] }
 0xa0e   :  { %2535 = vtanh.f32 %v519_v33 }
 0xa18   :  { %v2536_v38 = vpop.eup %2535 }
 0xa19   :  { %522 = vrot.lane.b32.xlu0 %v2536_v38, %s2633_s1 }
 0xa8b   :  { %v523_v39 = vpop.permute.xlu0 %522 }
 0xa8c   :  { %v525_v40 = vmul.f32 %v2534_v26, %v523_v39 }
 0xa8e   :  { %527 = vrot.lane.b32.xlu1 %v525_v40, %s2634_s3 }
 0xb00   :  { %v528_v41 = vpop.permute.xlu1 %527 }
 0xb01   :  { %530 = vst.msk [vmem:[#allocation2 + $0x18] sm:$0xff] %vm220_vm2, %v528_v41  ;;  %2242 = vmatmul.mubr.msk.f32.vlgmr.msra.gmra.mrb[8].mxu1 %vm220_vm2, %v528_v41 }
 0xb02   :  { %2430 = vmatpush3.bf16.msra.mxu1 %v2733_v25  ;;  %2263 = vmatprep.mubr.msk.f32.mxu1 %vm2636_vm1, %v2637_v30 }
 0xb03   :  { %2431 = vmatprep.subr.bf16.mxu1 %v2635_v22 }
 0xb06   :  { %2433 = vmatpush3.bf16.msra.mxu1 %v2747_v29 }
 0xb07   :  { %2441 = vmatprep.subr.bf16.mxu1 %v2440_v9 }
 0xb08   :  { %v955_v20 = vld [vmem:[#allocation2 + $0x18] sm:$0xff] }
 0xbd4   :  { %v600_v43 = vpop.f32.mrb[8].mxu1 }
 0xbd5   :  { %v604_v44 = vadd.f32 %v600_v43, %v165_v42  ;;  %v2243_v45 = vpop.f32.mrb[9].mxu1 }
 0xbd7   :  { %2537 = vtanh.f32 %v604_v44  ;;  %v2040_v47 = vmul.f32 -1.442695, %v604_v44 }
 0xbd9   :  { %2539 = vpow2.f32 %v2040_v47 }
 0xbe1   :  { %v2538_v46 = vpop.eup %2537 }
 0xbe2   :  { %614 = vrot.lane.b32.xlu0 %v2538_v46, %s2633_s1 }
 0xbe3   :  { %v2540_v48 = vpop.eup %2539 }
 0xbe4   :  { %v608_v49 = vadd.f32 1.0, %v2540_v48 }
 0xbe6   :  { %2541 = vrcp.f32 %v608_v49 }
 0xbf0   :  { %v2542_v50 = vpop.eup %2541 }
 0xbf1   :  { %v612_v53 = vmul.f32 %v2542_v50, %v519_v33 }
 0xc54   :  { %v615_v51 = vpop.permute.xlu0 %614 }
 0xc55   :  { %v617_v52 = vmul.f32 %v2542_v50, %v615_v51 }
 0xc57   :  { %619 = vrot.lane.b32.xlu1 %v617_v52, %s2634_s3 }
 0xcc9   :  { %v620_v54 = vpop.permute.xlu1 %619 }
 0xcca   :  { %v622_v35 = vadd.f32 %v620_v54, %v612_v53 }
 0xccc   :  { %2543 = vtanh.f32 %v622_v35 }
 0xcd6   :  { %v2544_v55 = vpop.eup %2543 }
 0xcd7   :  { %625 = vrot.lane.b32.xlu0 %v2544_v55, %s2633_s1 }
 0xd49   :  { %v626_v56 = vpop.permute.xlu0 %625 }
 0xd4a   :  { %v628_v57 = vmul.f32 %v2542_v50, %v626_v56 }
 0xd4c   :  { %630 = vrot.lane.b32.xlu1 %v628_v57, %s2634_s3 }
 0xdbe   :  { %v631_v58 = vpop.permute.xlu1 %630 }
 0xdbf   :  { %633 = vst.msk [vmem:[#allocation2 + $0x20] sm:$0xff] %vm220_vm2, %v631_v58  ;;  %2253 = vmatmul.mubr.msk.f32.vlgmr.msra.gmra.mrb[6].mxu0 %vm220_vm2, %v631_v58 }
 0xdc0   :  { %2436 = vmatpush3.bf16.msra.mxu0 %v2733_v25  ;;  %2274 = vmatprep.mubr.msk.f32.mxu0 %vm2636_vm1, %v2637_v30 }
 0xdc1   :  { %2437 = vmatprep.subr.bf16.mxu0 %v2635_v22 }
 0xdc4   :  { %2439 = vmatpush3.bf16.msra.mxu0 %v2747_v29 }
 0xdc5   :  { %2448 = vmatprep.subr.bf16.mxu0 %v2635_v22 }
 0xdc6   :  { %v956_v21 = vld [vmem:[#allocation2 + $0x20] sm:$0xff] }
 0xe92   :  { %v703_v60 = vpop.f32.mrb[6].mxu0 }
 0xe93   :  { %v707_v61 = vadd.f32 %v703_v60, %v170_v59  ;;  %v2254_v62 = vpop.f32.mrb[7].mxu0 }
 0xe95   :  { %2545 = vtanh.f32 %v707_v61  ;;  %v2042_v25 = vmul.f32 -1.442695, %v707_v61 }
 0xe97   :  { %2547 = vpow2.f32 %v2042_v25  ;;  %v948_v25 = vld [vmem:[%s3105_s5 + $0x8] sm:$0xff] }
 0xe9f   :  { %v2546_v63 = vpop.eup %2545 }
 0xea0   :  { %717 = vrot.lane.b32.xlu0 %v2546_v63, %s2633_s1  ;;  %v947_v63 = vld [vmem:[%s3105_s5] sm:$0xff] }
 0xea1   :  { %v2548_v0 = vpop.eup %2547 }
 0xea2   :  { %v711_v1 = vadd.f32 1.0, %v2548_v0  ;;  %v2905_v0 = vpack.c.bf16 %v948_v25, %v947_v63 }
 0xea4   :  { %2549 = vrcp.f32 %v711_v1  ;;  %v949_v1 = vld [vmem:[%s3105_s5 + $0x10] sm:$0xff] }
 0xeae   :  { %v2550_v2 = vpop.eup %2549 }
 0xeaf   :  { %v715_v4 = vmul.f32 %v2550_v2, %v622_v35 }
 0xf12   :  { %v718_v3 = vpop.permute.xlu0 %717 }
 0xf13   :  { %v720_v29 = vmul.f32 %v2550_v2, %v718_v3 }
 0xf15   :  { %722 = vrot.lane.b32.xlu1 %v720_v29, %s2634_s3 }
 0xf87   :  { %v723_v6 = vpop.permute.xlu1 %722 }
 0xf88   :  { %v2845_v34 = vadd.f32 %v723_v6, %v715_v4 }
 0xf8a   :  { %2551 = vtanh.f32 %v2845_v34 }
 0xf94   :  { %v2552_v10 = vpop.eup %2551 }
 0xf95   :  { %728 = vrot.lane.b32.xlu0 %v2552_v10, %s2633_s1  ;;  %v180_v10 = vadd.f32 %v2765_v36, %v2705_v5 }
0x1007   :  { %v729_v11 = vpop.permute.xlu0 %728 }
0x1008   :  { %v731_v12 = vmul.f32 %v2550_v2, %v729_v11  ;;  %v950_v2 = vld [vmem:[%s3105_s5 + $0x18] sm:$0xff] }
0x1009   :  { %v2915_v3 = vpack.c.bf16 %v950_v2, %v949_v1 }
0x100a   :  { %733 = vrot.lane.b32.xlu1 %v731_v12, %s2634_s3 }
0x107c   :  { %v734_v16 = vpop.permute.xlu1 %733 }
0x107d   :  { %736 = vst.msk [vmem:[#allocation2 + $0x28] sm:$0xff] %vm220_vm2, %v734_v16  ;;  %2264 = vmatmul.mubr.msk.f32.vlgmr.msra.gmra.mrb[10].mxu1 %vm220_vm2, %v734_v16 }
0x107e   :  { %2443 = vmatpush3.bf16.msra.mxu1 %v2440_v9  ;;  %2285 = vmatprep.mubr.msk.f32.mxu1 %vm220_vm2, %v952_v17 }
0x107f   :  { %2445 = vmatprep.subr.bf16.mxu1 %v2444_v15 }
0x1082   :  { %2447 = vmatpush3.bf16.msra.mxu1 %v2444_v15 }
0x1083   :  { %2460 = vmatprep.subr.bf16.mxu1 %v2635_v22 }
0x1084   :  { %v957_v23 = vld [vmem:[#allocation2 + $0x28] sm:$0xff] }
0x1085   :  { %2286 = vmatmul.mubr.msk.f32.vlgmr.msra.gmra.mrb[12].mxu1 %vm220_vm2, %v953_v18 }
0x1086   :  { %2288 = vmatprep.mubr.msk.f32.mxu1 %vm220_vm2, %v954_v19  ;;  %2462 = vmatpush3.bf16.msra.mxu1 %v2905_v0 }
0x1087   :  { %2463 = vmatprep.subr.bf16.mxu1 %v2635_v22 }
0x1089   :  { %2289 = vmatmul.mubr.msk.f32.gmra.mrb[14].mxu1 %vm220_vm2, %v955_v20 }
0x108a   :  { %2291 = vmatprep.mubr.msk.f32.mxu1 %vm220_vm2, %v956_v21  ;;  %2465 = vmatpush3.bf16.msra.mxu1 %v2915_v3 }
0x108b   :  { %2472 = vmatprep.subr.bf16.mxu1 %v2635_v22 }
0x108d   :  { %2292 = vmatmul.mubr.msk.f32.gmra.mrb[16].mxu1 %vm220_vm2, %v957_v23 }
0x1150   :  { %v806_v26 = vpop.f32.mrb[10].mxu1 }
0x1151   :  { %v810_v27 = vadd.f32 %v806_v26, %v175_v24  ;;  %v2265_v28 = vpop.f32.mrb[11].mxu1 }
0x1153   :  { %2553 = vtanh.f32 %v810_v27  ;;  %v2044_v44 = vmul.f32 -1.442695, %v810_v27 }
0x1158   :  { %v2878_v32 = vpop.f32.mrb[12].mxu1 }
0x1159   :  { %v1056_v33 = vpop.f32.mrb[13].mxu1  ;;  %v1062_v14 = vadd.f32 %v2878_v32, %v2876_v31 }
0x115a   :  { %v1057_v38 = vadd.f32 %v2876_v31, %v1056_v33 }
0x115c   :  { %2555 = vtanh.f32 %v1057_v38  ;;  %v2881_v39 = vpop.f32.mrb[14].mxu1  ;;  %v2056_v45 = vmul.f32 -1.442695, %v1057_v38 }
0x115d   :  { %v2554_v40 = vpop.eup %2553  ;;  %v2883_v41 = vpop.f32.mrb[15].mxu1  ;;  %2557 = vpow2.f32 %v2044_v44 }
0x115e   :  { %820 = vrot.lane.b32.xlu0 %v2554_v40, %s2633_s1  ;;  %2559 = vpow2.f32 %v2056_v45 }
0x1160   :  { %v2886_v37 = vpop.f32.mrb[16].mxu1 }
0x1161   :  { %v2888_v42 = vpop.f32.mrb[17].mxu1 }
0x1166   :  { %v2556_v43 = vpop.eup %2555 }
0x1167   :  { %1113 = vrot.lane.b32.xlu1 %v2556_v43, %s2633_s1  ;;  %v2558_v46 = vpop.eup %2557 }
0x1168   :  { %v814_v47 = vadd.f32 1.0, %v2558_v46  ;;  %v2560_v48 = vpop.eup %2559 }
0x1169   :  { %v1107_v49 = vadd.f32 1.0, %v2560_v48 }
0x116a   :  { %2561 = vrcp.f32 %v814_v47 }
0x116b   :  { %2563 = vrcp.f32 %v1107_v49 }
0x1174   :  { %v2562_v50 = vpop.eup %2561 }
0x1175   :  { %v2564_v53 = vpop.eup %2563  ;;  %v818_v55 = vmul.f32 %v2562_v50, %v2845_v34 }
0x1176   :  { %v1111_v58 = vmul.f32 0.0, %v2564_v53 }
0x11d0   :  { %v821_v51 = vpop.permute.xlu0 %820 }
0x11d1   :  { %v823_v52 = vmul.f32 %v2562_v50, %v821_v51 }
0x11d3   :  { %825 = vrot.lane.b32.xlu0 %v823_v52, %s2634_s3 }
0x11d9   :  { %v1114_v54 = vpop.permute.xlu1 %1113 }
0x11da   :  { %v1116_v35 = vmul.f32 %v2564_v53, %v1114_v54 }
0x11dc   :  { %1118 = vrot.lane.b32.xlu1 %v1116_v35, %s2634_s3  ;;  %v1067_v35 = vadd.f32 %v2876_v31, %v2883_v41 }
0x1245   :  { %v826_v56 = vpop.permute.xlu0 %825 }
0x1246   :  { %v2894_v57 = vadd.f32 %v826_v56, %v818_v55 }
0x1248   :  { %2565 = vtanh.f32 %v2894_v57 }
0x124e   :  { %v1119_v59 = vpop.permute.xlu1 %1118 }
0x124f   :  { %v1121_v60 = vadd.f32 %v1119_v59, %v1111_v58 }
0x1251   :  { %2567 = vtanh.f32 %v1121_v60 }
0x1252   :  { %v2566_v61 = vpop.eup %2565 }
0x1253   :  { %831 = vrot.lane.b32.xlu0 %v2566_v61, %s2633_s1 }
0x125b   :  { %v2568_v62 = vpop.eup %2567 }
0x125c   :  { %1124 = vrot.lane.b32.xlu1 %v2568_v62, %s2633_s1 }
0x12c5   :  { %v832_v29 = vpop.permute.xlu0 %831 }
0x12c6   :  { %v834_v4 = vmul.f32 %v2562_v50, %v832_v29 }
0x12c8   :  { %836 = vrot.lane.b32.xlu0 %v834_v4, %s2634_s3 }
0x12ce   :  { %v1125_v6 = vpop.permute.xlu1 %1124 }
0x12cf   :  { %v1127_v34 = vmul.f32 %v2564_v53, %v1125_v6 }
0x12d1   :  { %1129 = vrot.lane.b32.xlu1 %v1127_v34, %s2634_s3 }
0x133a   :  { %v837_v7 = vpop.permute.xlu0 %836 }
0x133b   :  { %839 = vst.msk [vmem:[#allocation2 + $0x30] sm:$0xff] %vm220_vm2, %v837_v7  ;;  %2275 = vmatmul.mubr.msk.f32.vlgmr.msra.gmra.mrb[8].mxu0 %vm220_vm2, %v837_v7 }
0x133c   :  { %2450 = vmatpush3.bf16.msra.mxu0 %v2905_v0  ;;  %2305 = vmatprep.mubr.msk.f32.mxu0 %vm2636_vm1, %v2637_v30 }
0x133d   :  { %2451 = vmatprep.subr.bf16.mxu0 %v2635_v22 }
0x1340   :  { %2453 = vmatpush3.bf16.msra.mxu0 %v2915_v3 }
0x1341   :  { %2454 = vmatprep.subr.bf16.mxu0 %v2635_v22 }
0x1342   :  { %v958_v8 = vld [vmem:[#allocation2 + $0x30] sm:$0xff] }
0x1343   :  { %v1130_v9 = vpop.permute.xlu1 %1129  ;;  %2294 = vmatprep.mubr.msk.f32.mxu1 %vm220_vm2, %v958_v8 }
0x1344   :  { %1132 = vst.msk [vmem:[#allocation3] sm:$0xff] %vm220_vm2, %v1130_v9  ;;  %2306 = vmatmul.mubr.msk.f32.vlgmr.msra.gmra.mrb[10].mxu0 %vm220_vm2, %v1130_v9 }
0x1345   :  { %2456 = vmatpush3.bf16.msra.mxu0 %v2905_v0  ;;  %2316 = vmatprep.mubr.msk.f32.mxu0 %vm2636_vm1, %v2637_v30 }
0x1346   :  { %2457 = vmatprep.subr.bf16.mxu0 %v2635_v22 }
0x1349   :  { %2459 = vmatpush3.bf16.msra.mxu0 %v2915_v3 }
0x134a   :  { %2466 = vmatprep.subr.bf16.mxu0 %v2635_v22 }
0x140e   :  { %v909_v11 = vpop.f32.mrb[8].mxu0 }
0x140f   :  { %v913_v12 = vadd.f32 %v909_v11, %v180_v10  ;;  %v2276_v13 = vpop.f32.mrb[9].mxu0  ;;  %v1072_v11 = vadd.f32 %v2881_v39, %v2876_v31 }
0x1411   :  { %v2046_v33 = vmul.f32 -1.442695, %v913_v12 }
0x1417   :  { %v1202_v15 = vpop.f32.mrb[10].mxu0 }
0x1418   :  { %v1206_v16 = vadd.f32 %v1202_v15, %v1062_v14  ;;  %v2307_v17 = vpop.f32.mrb[11].mxu0 }
0x141a   :  { %2569 = vtanh.f32 %v1206_v16  ;;  %v2058_v19 = vmul.f32 -1.442695, %v1206_v16 }
0x141c   :  { %2571 = vpow2.f32 %v2058_v19 }
0x1424   :  { %v2570_v18 = vpop.eup %2569 }
0x1425   :  { %1216 = vrot.lane.b32.xlu0 %v2570_v18, %s2633_s1 }
0x1426   :  { %v2572_v20 = vpop.eup %2571 }
0x1427   :  { %v1210_v21 = vadd.f32 1.0, %v2572_v20 }
0x1429   :  { %2573 = vrcp.f32 %v1210_v21 }
0x1433   :  { %v2574_v23 = vpop.eup %2573 }
0x1434   :  { %v1214_v24 = vmul.f32 %v2574_v23, %v1121_v60 }
0x1497   :  { %v1217_v5 = vpop.permute.xlu0 %1216 }
0x1498   :  { %v1219_v36 = vmul.f32 %v2574_v23, %v1217_v5 }
0x149a   :  { %1221 = vrot.lane.b32.xlu1 %v1219_v36, %s2634_s3 }
0x150c   :  { %v1222_v26 = vpop.permute.xlu1 %1221 }
0x150d   :  { %v1224_v27 = vadd.f32 %v1222_v26, %v1214_v24 }
0x150f   :  { %2575 = vtanh.f32 %v1224_v27 }
0x1510   :  { %2577 = vtanh.f32 %v913_v12 }
0x1511   :  { %2579 = vpow2.f32 %v2046_v33 }
0x1519   :  { %v2576_v28 = vpop.eup %2575 }
0x151a   :  { %1227 = vrot.lane.b32.xlu0 %v2576_v28, %s2633_s1  ;;  %v2578_v32 = vpop.eup %2577  ;;  %v1077_v28 = vadd.f32 %v2876_v31, %v2888_v42 }
0x151b   :  { %v2580_v38 = vpop.eup %2579 }
0x151c   :  { %v917_v40 = vadd.f32 1.0, %v2580_v38 }
0x151e   :  { %923 = vrot.lane.b32.xlu0 %v2578_v32, %s2633_s1  ;;  %2581 = vrcp.f32 %v917_v40 }
0x1528   :  { %v2582_v45 = vpop.eup %2581 }
0x1529   :  { %v921_v49 = vmul.f32 %v2582_v45, %v2894_v57 }
0x158c   :  { %v1228_v43 = vpop.permute.xlu0 %1227 }
0x158d   :  { %v1230_v44 = vmul.f32 %v2574_v23, %v1228_v43 }
0x158f   :  { %1232 = vrot.lane.b32.xlu1 %v1230_v44, %s2634_s3 }
0x1590   :  { %v924_v46 = vpop.permute.xlu0 %923 }
0x1591   :  { %v926_v47 = vmul.f32 %v2582_v45, %v924_v46 }
0x1593   :  { %928 = vrot.lane.b32.xlu0 %v926_v47, %s2634_s3 }
0x1601   :  { %v1233_v48 = vpop.permute.xlu1 %1232 }
0x1602   :  { %1235 = vst.msk [vmem:[#allocation3 + $0x8] sm:$0xff] %vm220_vm2, %v1233_v48  ;;  %2317 = vmatmul.mubr.msk.f32.vlgmr.msra.gmra.mrb[12].mxu0 %vm220_vm2, %v1233_v48 }
0x1603   :  { %2468 = vmatpush3.bf16.msra.mxu0 %v2905_v0  ;;  %2338 = vmatprep.mubr.msk.f32.mxu0 %vm2636_vm1, %v2637_v30 }
0x1604   :  { %2469 = vmatprep.subr.bf16.mxu0 %v2635_v22 }
0x1605   :  { %v929_v50 = vpop.permute.xlu0 %928 }
0x1606   :  { %v931_v51 = vadd.f32 %v929_v50, %v921_v49 }
0x1607   :  { %2471 = vmatpush3.bf16.msra.mxu0 %v2915_v3 }
0x1608   :  { %2583 = vtanh.f32 %v931_v51  ;;  %2478 = vmatprep.subr.bf16.mxu0 %v2635_v22 }
0x1612   :  { %v2584_v52 = vpop.eup %2583 }
0x1613   :  { %934 = vrot.lane.b32.xlu0 %v2584_v52, %s2633_s1 }
0x1685   :  { %v935_v53 = vpop.permute.xlu0 %934 }
0x1686   :  { %v937_v54 = vmul.f32 %v2582_v45, %v935_v53 }
0x1688   :  { %939 = vrot.lane.b32.xlu0 %v937_v54, %s2634_s3 }
0x16d5   :  { %v1305_v55 = vpop.f32.mrb[12].mxu0 }
0x16d6   :  { %v1309_v56 = vadd.f32 %v1305_v55, %v1067_v35  ;;  %v2318_v57 = vpop.f32.mrb[13].mxu0  ;;  %v1082_v35 = vadd.f32 %v2886_v37, %v2876_v31 }
0x16d8   :  { %2585 = vtanh.f32 %v1309_v56  ;;  %v2060_v61 = vmul.f32 -1.442695, %v1309_v56 }
0x16da   :  { %2587 = vpow2.f32 %v2060_v61 }
0x16e2   :  { %v2586_v58 = vpop.eup %2585 }
0x16e3   :  { %1319 = vrot.lane.b32.xlu1 %v2586_v58, %s2633_s1 }
0x16e4   :  { %v2588_v62 = vpop.eup %2587 }
0x16e5   :  { %v1313_v41 = vadd.f32 1.0, %v2588_v62 }
0x16e7   :  { %2589 = vrcp.f32 %v1313_v41  ;;  %v1870_v41 = vld [vmem:[%s3106_s7] sm:$0xff] }
0x16f1   :  { %v2590_v63 = vpop.eup %2589 }
0x16f2   :  { %v1317_v2 = vmul.f32 %v2590_v63, %v1224_v27 }
0x16fa   :  { %v940_v59 = vpop.permute.xlu0 %939 }
0x16fb   :  { %942 = vst.msk [vmem:[#allocation2 + $0x38] sm:$0xff] %vm220_vm2, %v940_v59 }
0x1702   :  { %v959_v60 = vld [vmem:[#allocation2 + $0x38] sm:$0xff] }
0x1703   :  { %2295 = vmatmul.mubr.msk.f32.gmra.mrb[18].mxu1 %vm220_vm2, %v959_v60 }
0x1704   :  { %2327 = vmatprep.mubr.msk.f32.mxu1 %vm2636_vm1, %v2637_v30 }
0x1755   :  { %v1320_v25 = vpop.permute.xlu1 %1319 }
0x1756   :  { %v1322_v1 = vmul.f32 %v2590_v63, %v1320_v25 }
0x1758   :  { %1324 = vrot.lane.b32.xlu1 %v1322_v1, %s2634_s3 }
0x17ca   :  { %v1325_v29 = vpop.permute.xlu1 %1324 }
0x17cb   :  { %v1327_v4 = vadd.f32 %v1325_v29, %v1317_v2 }
0x17cd   :  { %2591 = vtanh.f32 %v1327_v4 }
0x17d6   :  { %v2967_v6 = vpop.f32.mrb[18].mxu1 }
0x17d7   :  { %v2592_v34 = vpop.eup %2591  ;;  %v2969_v7 = vpop.f32.mrb[19].mxu1 }
0x17d8   :  { %1330 = vrot.lane.b32.xlu1 %v2592_v34, %s2633_s1  ;;  %v1873_v34 = vld [vmem:[%s3106_s7 + $0x18] sm:$0xff] }
0x184a   :  { %v1331_v8 = vpop.permute.xlu1 %1330 }
0x184b   :  { %v1333_v9 = vmul.f32 %v2590_v63, %v1331_v8  ;;  %v1871_v63 = vld [vmem:[%s3106_s7 + $0x8] sm:$0xff]  ;;  %v1854_v8 = vld [vmem:[#allocation3] sm:$0xff] }
0x184c   :  { %v2490_v25 = vpack.c.bf16 %v1871_v63, %v1870_v41 }
0x184d   :  { %1335 = vrot.lane.b32.xlu1 %v1333_v9, %s2634_s3 }
0x18bf   :  { %v1336_v10 = vpop.permute.xlu1 %1335 }
0x18c0   :  { %1338 = vst.msk [vmem:[#allocation3 + $0x10] sm:$0xff] %vm220_vm2, %v1336_v10  ;;  %2328 = vmatmul.mubr.msk.f32.vlgmr.msra.gmra.mrb[20].mxu1 %vm220_vm2, %v1336_v10 }
0x18c1   :  { %2474 = vmatpush3.bf16.msra.mxu1 %v2905_v0  ;;  %2349 = vmatprep.mubr.msk.f32.mxu1 %vm2636_vm1, %v2637_v30 }
0x18c2   :  { %2475 = vmatprep.subr.bf16.mxu1 %v2635_v22 }
0x18c5   :  { %2477 = vmatpush3.bf16.msra.mxu1 %v2915_v3 }
0x18c6   :  { %2484 = vmatprep.subr.bf16.mxu1 %v2635_v22 }
0x1993   :  { %v1408_v12 = vpop.f32.mrb[20].mxu1 }
0x1994   :  { %v1412_v13 = vadd.f32 %v1408_v12, %v1072_v11  ;;  %v2329_v14 = vpop.f32.mrb[21].mxu1  ;;  %v1862_v11 = vmax.f32 %v1854_v8, 0.0  ;;  %v1855_v12 = vld [vmem:[#allocation3 + $0x8] sm:$0xff] }
0x1995   :  { %v1863_v14 = vmax.f32 %v1855_v12, 0.0 }
0x1996   :  { %2593 = vtanh.f32 %v1412_v13  ;;  %v2062_v16 = vmul.f32 -1.442695, %v1412_v13  ;;  %v1856_v13 = vld [vmem:[#allocation3 + $0x10] sm:$0xff] }
0x1998   :  { %2595 = vpow2.f32 %v2062_v16 }
0x19a0   :  { %v2594_v15 = vpop.eup %2593 }
0x19a1   :  { %1422 = vrot.lane.b32.xlu0 %v2594_v15, %s2633_s1  ;;  %v1864_v15 = vmax.f32 %v1856_v13, 0.0 }
0x19a2   :  { %v2596_v17 = vpop.eup %2595 }
0x19a3   :  { %v1416_v18 = vadd.f32 1.0, %v2596_v17 }
0x19a5   :  { %2597 = vrcp.f32 %v1416_v18 }
0x19af   :  { %v2598_v19 = vpop.eup %2597 }
0x19b0   :  { %v1420_v23 = vmul.f32 %v2598_v19, %v1327_v4  ;;  %v1872_v4 = vld [vmem:[%s3106_s7 + $0x10] sm:$0xff] }
0x19b1   :  { %v2494_v9 = vpack.c.bf16 %v1873_v34, %v1872_v4 }
0x1a13   :  { %v1423_v20 = vpop.permute.xlu0 %1422 }
0x1a14   :  { %v1425_v21 = vmul.f32 %v2598_v19, %v1423_v20 }
0x1a16   :  { %1427 = vrot.lane.b32.xlu1 %v1425_v21, %s2634_s3 }
0x1a88   :  { %v1428_v5 = vpop.permute.xlu1 %1427 }
0x1a89   :  { %v1430_v39 = vadd.f32 %v1428_v5, %v1420_v23  ;;  %v1087_v23 = vadd.f32 %v2876_v31, %v2969_v7 }
0x1a8b   :  { %2599 = vtanh.f32 %v1430_v39 }
0x1a95   :  { %v2600_v36 = vpop.eup %2599 }
0x1a96   :  { %1433 = vrot.lane.b32.xlu0 %v2600_v36, %s2633_s1 }
0x1b08   :  { %v1434_v24 = vpop.permute.xlu0 %1433 }
0x1b09   :  { %v1436_v26 = vmul.f32 %v2598_v19, %v1434_v24  ;;  %v3041_v24 = vld [vmem:[%s3107_s8] ss:$0 sm:$0xff] }
0x1b0b   :  { %1438 = vrot.lane.b32.xlu1 %v1436_v26, %s2634_s3 }
0x1b7d   :  { %v1439_v27 = vpop.permute.xlu1 %1438 }
0x1b7e   :  { %1441 = vst.msk [vmem:[#allocation3 + $0x18] sm:$0xff] %vm220_vm2, %v1439_v27  ;;  %2339 = vmatmul.mubr.msk.f32.vlgmr.msra.gmra.mrb[14].mxu0 %vm220_vm2, %v1439_v27 }
0x1b7f   :  { %2480 = vmatpush3.bf16.msra.mxu0 %v2905_v0  ;;  %2360 = vmatprep.mubr.msk.f32.mxu0 %vm2636_vm1, %v2637_v30 }
0x1b80   :  { %2481 = vmatprep.subr.bf16.mxu0 %v2635_v22 }
0x1b83   :  { %2483 = vmatpush3.bf16.msra.mxu0 %v2915_v3 }
0x1b84   :  { %2491 = vmatprep.subr.bf16.mxu0 %v2490_v25 }
0x1b85   :  { %v1857_v16 = vld [vmem:[#allocation3 + $0x18] sm:$0xff] }
0x1b86   :  { %v1865_v18 = vmax.f32 %v1857_v16, 0.0 }
0x1c51   :  { %v1511_v32 = vpop.f32.mrb[14].mxu0 }
0x1c52   :  { %v1515_v33 = vadd.f32 %v1511_v32, %v1077_v28  ;;  %v2340_v38 = vpop.f32.mrb[15].mxu0 }
0x1c54   :  { %2601 = vtanh.f32 %v1515_v33  ;;  %v2064_v43 = vmul.f32 -1.442695, %v1515_v33 }
0x1c56   :  { %2603 = vpow2.f32 %v2064_v43 }
0x1c5e   :  { %v2602_v40 = vpop.eup %2601 }
0x1c5f   :  { %1525 = vrot.lane.b32.xlu0 %v2602_v40, %s2633_s1 }
0x1c60   :  { %v2604_v44 = vpop.eup %2603 }
0x1c61   :  { %v1519_v45 = vadd.f32 1.0, %v2604_v44 }
0x1c63   :  { %2605 = vrcp.f32 %v1519_v45 }
0x1c6d   :  { %v2606_v46 = vpop.eup %2605 }
0x1c6e   :  { %v1523_v49 = vmul.f32 %v2606_v46, %v1430_v39 }
0x1cd1   :  { %v1526_v47 = vpop.permute.xlu0 %1525 }
0x1cd2   :  { %v1528_v48 = vmul.f32 %v2606_v46, %v1526_v47 }
0x1cd4   :  { %1530 = vrot.lane.b32.xlu1 %v1528_v48, %s2634_s3 }
0x1d46   :  { %v1531_v50 = vpop.permute.xlu1 %1530 }
0x1d47   :  { %v1533_v42 = vadd.f32 %v1531_v50, %v1523_v49 }
0x1d49   :  { %2607 = vtanh.f32 %v1533_v42 }
0x1d53   :  { %v2608_v51 = vpop.eup %2607 }
0x1d54   :  { %1536 = vrot.lane.b32.xlu0 %v2608_v51, %s2633_s1 }
0x1dc6   :  { %v1537_v52 = vpop.permute.xlu0 %1536 }
0x1dc7   :  { %v1539_v53 = vmul.f32 %v2606_v46, %v1537_v52 }
0x1dc9   :  { %1541 = vrot.lane.b32.xlu1 %v1539_v53, %s2634_s3 }
0x1e3b   :  { %v1542_v54 = vpop.permute.xlu1 %1541 }
0x1e3c   :  { %1544 = vst.msk [vmem:[#allocation3 + $0x20] sm:$0xff] %vm220_vm2, %v1542_v54  ;;  %2350 = vmatmul.mubr.msk.f32.vlgmr.msra.gmra.mrb[22].mxu1 %vm220_vm2, %v1542_v54 }
0x1e3d   :  { %2486 = vmatpush3.bf16.msra.mxu1 %v2905_v0  ;;  %2371 = vmatprep.mubr.msk.f32.mxu1 %vm2636_vm1, %v2637_v30 }
0x1e3e   :  { %2487 = vmatprep.subr.bf16.mxu1 %v2635_v22 }
0x1e41   :  { %2489 = vmatpush3.bf16.msra.mxu1 %v2915_v3 }
0x1e43   :  { %v1858_v17 = vld [vmem:[#allocation3 + $0x20] sm:$0xff] }
0x1e44   :  { %v1866_v19 = vmax.f32 %v1858_v17, 0.0 }
0x1f0f   :  { %v1614_v55 = vpop.f32.mrb[22].mxu1 }
0x1f10   :  { %v1618_v56 = vadd.f32 %v1614_v55, %v1082_v35  ;;  %v2351_v57 = vpop.f32.mrb[23].mxu1 }
0x1f12   :  { %2609 = vtanh.f32 %v1618_v56  ;;  %v2066_v59 = vmul.f32 -1.442695, %v1618_v56 }
0x1f14   :  { %2611 = vpow2.f32 %v2066_v59 }
0x1f1c   :  { %v2610_v58 = vpop.eup %2609 }
0x1f1d   :  { %1628 = vrot.lane.b32.xlu0 %v2610_v58, %s2633_s1 }
0x1f1e   :  { %v2612_v0 = vpop.eup %2611 }
0x1f1f   :  { %v1622_v60 = vadd.f32 1.0, %v2612_v0 }
0x1f21   :  { %2613 = vrcp.f32 %v1622_v60  ;;  %v1092_v60 = vadd.f32 %v2967_v6, %v2876_v31 }
0x1f2b   :  { %v2614_v30 = vpop.eup %2613 }
0x1f2c   :  { %v1626_v3 = vmul.f32 %v2614_v30, %v1533_v42 }
0x1f8f   :  { %v1629_v61 = vpop.permute.xlu0 %1628 }
0x1f90   :  { %v1631_v22 = vmul.f32 %v2614_v30, %v1629_v61 }
0x1f92   :  { %1633 = vrot.lane.b32.xlu1 %v1631_v22, %s2634_s3 }
0x2004   :  { %v1634_v62 = vpop.permute.xlu1 %1633 }
0x2005   :  { %v3011_v37 = vadd.f32 %v1634_v62, %v1626_v3 }
0x2007   :  { %2615 = vtanh.f32 %v3011_v37 }
0x2011   :  { %v2616_v1 = vpop.eup %2615 }
0x2012   :  { %1639 = vrot.lane.b32.xlu0 %v2616_v1, %s2633_s1 }
0x2084   :  { %v1640_v2 = vpop.permute.xlu0 %1639 }
0x2085   :  { %v1642_v29 = vmul.f32 %v2614_v30, %v1640_v2 }
0x2087   :  { %1644 = vrot.lane.b32.xlu1 %v1642_v29, %s2634_s3 }
0x20f9   :  { %v1645_v10 = vpop.permute.xlu1 %1644 }
0x20fa   :  { %1647 = vst.msk [vmem:[#allocation3 + $0x28] sm:$0xff] %vm220_vm2, %v1645_v10  ;;  %2361 = vmatmul.mubr.msk.f32.vlgmr.msra.gmra.mrb[16].mxu0 %vm220_vm2, %v1645_v10 }
0x20fb   :  { %2493 = vmatpush3.bf16.msra.mxu0 %v2490_v25  ;;  %2382 = vmatprep.mubr.msk.f32.mxu0 %vm220_vm2, %v1862_v11 }
0x20fc   :  { %2495 = vmatprep.subr.bf16.mxu0 %v2494_v9 }
0x20ff   :  { %2497 = vmatpush3.bf16.msra.mxu0 %v2494_v9 }
0x2101   :  { %v1859_v20 = vld [vmem:[#allocation3 + $0x28] sm:$0xff] }
0x2102   :  { %2383 = vmatmul.mubr.msk.f32.vlgmr.msra.gmra.mrb[18].mxu0 %vm220_vm2, %v1863_v14  ;;  %v1867_v21 = vmax.f32 %v1859_v20, 0.0 }
0x2103   :  { %2385 = vmatprep.mubr.msk.f32.mxu0 %vm220_vm2, %v1864_v15 }
0x2106   :  { %2386 = vmatmul.mubr.msk.f32.gmra.mrb[20].mxu0 %vm220_vm2, %v1865_v18 }
0x2107   :  { %2388 = vmatprep.mubr.msk.f32.mxu0 %vm220_vm2, %v1866_v19 }
0x210a   :  { %2389 = vmatmul.mubr.msk.f32.gmra.mrb[22].mxu0 %vm220_vm2, %v1867_v21 }
0x21cd   :  { %v1717_v5 = vpop.f32.mrb[16].mxu0 }
0x21ce   :  { %v1721_v39 = vadd.f32 %v1717_v5, %v1087_v23  ;;  %v2362_v36 = vpop.f32.mrb[17].mxu0 }
0x21d0   :  { %2617 = vtanh.f32 %v1721_v39  ;;  %v2068_v48 = vmul.f32 -1.442695, %v1721_v39 }
0x21d2   :  { %2619 = vpow2.f32 %v2068_v48 }
0x21d5   :  { %v2384_v26 = vpop.f32.mrb[18].mxu0 }
0x21d6   :  { %v1977_v27 = vadd.f32 %v2384_v26, %v3041_v24  ;;  %v1971_v28 = vpop.f32.mrb[19].mxu0 }
0x21d7   :  { %v1972_v32 = vadd.f32 %v3041_v24, %v1971_v28 }
0x21d8   :  { %2012 = vst.msk [vmem:[%s3108_s9 + $0x8] sm:$0xff] %vm2010_vm3, %v1977_v27 }
0x21d9   :  { %2011 = vst.msk [vmem:[%s3108_s9] sm:$0xff] %vm2010_vm3, %v1972_v32  ;;  %v2387_v7 = vpop.f32.mrb[20].mxu0 }
0x21da   :  { %v2618_v33 = vpop.eup %2617  ;;  %v1987_v38 = vadd.f32 %v2387_v7, %v3041_v24  ;;  %v1981_v40 = vpop.f32.mrb[21].mxu0 }
0x21db   :  { %v1982_v43 = vadd.f32 %v3041_v24, %v1981_v40  ;;  %1731 = vrot.lane.b32.xlu0 %v2618_v33, %s2633_s1 }
0x21dc   :  { %2014 = vst.msk [vmem:[%s3108_s9 + $0x18] sm:$0xff] %vm2010_vm3, %v1987_v38  ;;  %v2620_v49 = vpop.eup %2619 }
0x21dd   :  { %2013 = vst.msk [vmem:[%s3108_s9 + $0x10] sm:$0xff] %vm2010_vm3, %v1982_v43  ;;  %v2390_v44 = vpop.f32.mrb[22].mxu0  ;;  %v1725_v50 = vadd.f32 1.0, %v2620_v49 }
0x21de   :  { %v1997_v45 = vadd.f32 %v2390_v44, %v3041_v24  ;;  %v1991_v46 = vpop.f32.mrb[23].mxu0 }
0x21df   :  { %v1992_v47 = vadd.f32 %v3041_v24, %v1991_v46  ;;  %2621 = vrcp.f32 %v1725_v50 }
0x21e0   :  { %2016 = vst.msk [vmem:[%s3108_s9 + $0x28] sm:$0xff] %vm2010_vm3, %v1997_v45 }
0x21e1   :  { %2015 = vst.msk [vmem:[%s3108_s9 + $0x20] sm:$0xff] %vm2010_vm3, %v1992_v47 }
0x21e9   :  { %v2622_v42 = vpop.eup %2621 }
0x21ea   :  { %v1729_v53 = vmul.f32 %v2622_v42, %v3011_v37 }
0x224d   :  { %v1732_v51 = vpop.permute.xlu0 %1731 }
0x224e   :  { %v1734_v52 = vmul.f32 %v2622_v42, %v1732_v51 }
0x2250   :  { %1736 = vrot.lane.b32.xlu1 %v1734_v52, %s2634_s3 }
0x22c2   :  { %v1737_v54 = vpop.permute.xlu1 %1736 }
0x22c3   :  { %v1739_v35 = vadd.f32 %v1737_v54, %v1729_v53 }
0x22c5   :  { %2623 = vtanh.f32 %v1739_v35 }
0x22cf   :  { %v2624_v55 = vpop.eup %2623 }
0x22d0   :  { %1742 = vrot.lane.b32.xlu0 %v2624_v55, %s2633_s1 }
0x2342   :  { %v1743_v56 = vpop.permute.xlu0 %1742 }
0x2343   :  { %v1745_v57 = vmul.f32 %v2622_v42, %v1743_v56 }
0x2345   :  { %1747 = vrot.lane.b32.xlu1 %v1745_v57, %s2634_s3 }
0x23b7   :  { %v1748_v58 = vpop.permute.xlu1 %1747 }
0x23b8   :  { %1750 = vst.msk [vmem:[#allocation3 + $0x30] sm:$0xff] %vm220_vm2, %v1748_v58  ;;  %2372 = vmatmul.mubr.msk.f32.vlgmr.msra.gmra.mrb[24].mxu1 %vm220_vm2, %v1748_v58 }
0x23bf   :  { %v1860_v59 = vld [vmem:[#allocation3 + $0x30] sm:$0xff] }
0x23c0   :  { %v1868_v0 = vmax.f32 %v1860_v59, 0.0 }
0x23c2   :  { %2391 = vmatprep.mubr.msk.f32.mxu0 %vm220_vm2, %v1868_v0 }
0x248b   :  { %v1820_v30 = vpop.f32.mrb[24].mxu1 }
0x248c   :  { %v1824_v61 = vadd.f32 %v1820_v30, %v1092_v60  ;;  %v2373_v22 = vpop.f32.mrb[25].mxu1 }
0x248e   :  { %2625 = vtanh.f32 %v1824_v61  ;;  %v2070_v62 = vmul.f32 -1.442695, %v1824_v61 }
0x2490   :  { %2627 = vpow2.f32 %v2070_v62 }
0x2498   :  { %v2626_v3 = vpop.eup %2625 }
0x2499   :  { %1834 = vrot.lane.b32.xlu0 %v2626_v3, %s2633_s1 }
0x249a   :  { %v2628_v37 = vpop.eup %2627 }
0x249b   :  { %v1828_v41 = vadd.f32 1.0, %v2628_v37 }
0x249d   :  { %2629 = vrcp.f32 %v1828_v41 }
0x24a7   :  { %v2630_v63 = vpop.eup %2629 }
0x24a8   :  { %v1832_v2 = vmul.f32 %v2630_v63, %v1739_v35 }
0x250b   :  { %v1835_v25 = vpop.permute.xlu0 %1834 }
0x250c   :  { %v1837_v1 = vmul.f32 %v2630_v63, %v1835_v25 }
0x250e   :  { %1839 = vrot.lane.b32.xlu1 %v1837_v1, %s2634_s3 }
0x2580   :  { %v1840_v29 = vpop.permute.xlu1 %1839 }
0x2581   :  { %v1842_v31 = vadd.f32 %v1840_v29, %v1832_v2 }
0x2583   :  { %2631 = vtanh.f32 %v1842_v31 }
0x258d   :  { %v2632_v6 = vpop.eup %2631 }
0x258e   :  { %1845 = vrot.lane.b32.xlu0 %v2632_v6, %s2633_s1 }
0x2600   :  { %v1846_v4 = vpop.permute.xlu0 %1845 }
0x2601   :  { %v1848_v34 = vmul.f32 %v2630_v63, %v1846_v4 }
0x2603   :  { %1850 = vrot.lane.b32.xlu1 %v1848_v34, %s2634_s3 }
0x2675   :  { %v1851_v8 = vpop.permute.xlu1 %1850 }
0x2676   :  { %1853 = vst.msk [vmem:[#allocation3 + $0x38] sm:$0xff] %vm220_vm2, %v1851_v8 }
0x267d   :  { %v1861_v9 = vld [vmem:[#allocation3 + $0x38] sm:$0xff] }
0x267e   :  { %v1869_v10 = vmax.f32 %v1861_v9, 0.0 }
0x2680   :  { %2392 = vmatmul.mubr.msk.f32.gmra.mrb[24].mxu0 %vm220_vm2, %v1869_v10 }
0x2753   :  { %v2393_v11 = vpop.f32.mrb[24].mxu0 }
0x2754   :  { %v2007_v12 = vadd.f32 %v2393_v11, %v3041_v24  ;;  %v2001_v13 = vpop.f32.mrb[25].mxu0 }
0x2755   :  { %v2002_v14 = vadd.f32 %v3041_v24, %v2001_v13 }
0x2756   :  { %2018 = vst.msk [vmem:[%s3108_s9 + $0x38] sm:$0xff] %vm2010_vm3, %v2007_v12 }
0x2757   :  { %2017 = vst.msk [vmem:[%s3108_s9 + $0x30] sm:$0xff] %vm2010_vm3, %v2002_v14 }

</bundles_post_ra>
